<compile_context>
chip_gen: v5e
topology: v5e:2x2
jax: 0.10.0
libtpu: 0.0.40
codegen_flags: <defaults>
</compile_context>

<pallas_src>
import jax
import jax.numpy as jnp
from jax import lax
from jax.experimental import pallas as pl
from jax.experimental.pallas import tpu as pltpu

HIDDEN = 128                    # fixed by the PyTorch module (nn.LSTM hidden_size=128)
MATMUL_DTYPE = jnp.bfloat16     # MXU operand dtype for the recurrent matmul (f32 accumulation)


def lstm_fused_kernel(tok_ref, gxtab_ref, whh_ref, wfc_ref, bfc_ref, pred_ref):
    """Whole forward pass in one invocation (no grid).

    tok_ref  : (B, T)          int32 token ids, SMEM
    gxtab_ref: (vocab, 1, 4H)  f32  pre-folded  emb @ W_ih^T + b_ih + b_hh  (VMEM)
                               (leading-axis layout so the row gather is a plain
                                dynamic index on a non-tiled dimension)
    whh_ref  : (H, 4H)         bf16 W_hh^T (VMEM)
    wfc_ref  : (H, out)        f32  W_fc^T (VMEM)
    bfc_ref  : (1, out)        f32  b_fc   (VMEM)
    pred_ref : (B, out)        f32  output = fc(h_T)
    """
    B, T = tok_ref.shape
    H = whh_ref.shape[0]

    def step(t, carry):
        h, c = carry                                        # f32 (B, H)
        # Input projection for timestep t: one dynamic row gather per batch
        # element from the folded table (token id is a scalar SMEM read).
        rows = [gxtab_ref[tok_ref[b, t]] for b in range(B)]     # B x (1, 4H)
        gx = jnp.concatenate(rows, axis=0)                       # (B, 4H) f32
        # Recurrent projection: re-read W_hh^T from VMEM each step (cheap vlds,
        # hidden under MXU latency) instead of pinning a (128,512) live value.
        gates = gx + jnp.dot(h.astype(whh_ref.dtype), whh_ref[...],
                             preferred_element_type=jnp.float32)  # (B, 4H)
        # PyTorch gate order: i, f, g, o.
        i_g = jax.nn.sigmoid(gates[:, 0 * H:1 * H])
        f_g = jax.nn.sigmoid(gates[:, 1 * H:2 * H])
        g_g = jnp.tanh(gates[:, 2 * H:3 * H])
        o_g = jax.nn.sigmoid(gates[:, 3 * H:4 * H])
        c_new = f_g * c + i_g * g_g
        h_new = o_g * jnp.tanh(c_new)
        return h_new, c_new

    h0 = jnp.zeros((B, H), jnp.float32)
    c0 = jnp.zeros((B, H), jnp.float32)
    # Full unroll for short sequences; partial unroll for long ones so code size
    # and vreg live ranges stay bounded while cross-iteration slack is exposed.
    unroll = T if T <= 32 else 8
    h_fin, _ = lax.fori_loop(0, T, step, (h0, c0), unroll=unroll)

    # dropout(0.2) is identity in eval mode.
    # TODO(synk): training-mode dropout (Bernoulli mask via pltpu.prng_*) not implemented.
    pred_ref[...] = (
        jnp.dot(h_fin, wfc_ref[...], preferred_element_type=jnp.float32)
        + bfc_ref[...]
    )


def lstm_forward(x_tokens, params):
    """Replicates LSTM.forward(x) -> pred[0], shape (B, out_dim). Inference semantics."""
    tok = x_tokens.astype(jnp.int32)                      # (B, T); no-op if already int32
    B, T = tok.shape

    gx_table = params["gx_table"]                         # (vocab, 1, 4H) f32
    w_hh_t = params["w_hh_t"]                             # (H, 4H) bf16
    w_fc_t = params["w_fc_t"]                             # (H, out) f32
    b_fc = params["b_fc"]                                 # (1, out) f32
    vocab, _, h4 = gx_table.shape
    out_dim = w_fc_t.shape[1]

    # The folded table must fit in VMEM (leading-axis layout pads to 8 sublanes/row).
    table_vmem_bytes = vocab * 8 * h4 * 4
    assert table_vmem_bytes <= 16 * 1024 * 1024, (
        "vocab too large for a VMEM-resident folded embedding table")
    # TODO(synk): large-vocab path (DMA gather of table rows from HBM) not implemented.

    approx_bytes = (table_vmem_bytes
                    + w_hh_t.size * 2 + w_fc_t.size * 4 + b_fc.size * 4
                    + 8 * 128 * 4                          # padded output tile
                    + tok.size * 4)
    vmem_limit = int(min(64 * 1024 * 1024, max(2 * 1024 * 1024, 4 * approx_bytes)))

    pred = pl.pallas_call(
        lstm_fused_kernel,
        out_shape=jax.ShapeDtypeStruct((B, out_dim), jnp.float32),
        in_specs=[
            pl.BlockSpec(memory_space=pltpu.MemorySpace.SMEM),   # token ids
            pl.BlockSpec(memory_space=pltpu.MemorySpace.VMEM),   # folded emb/W_ih table
            pl.BlockSpec(memory_space=pltpu.MemorySpace.VMEM),   # W_hh^T
            pl.BlockSpec(memory_space=pltpu.MemorySpace.VMEM),   # W_fc^T
            pl.BlockSpec(memory_space=pltpu.MemorySpace.VMEM),   # b_fc
        ],
        out_specs=pl.BlockSpec(memory_space=pltpu.MemorySpace.VMEM),
        compiler_params=pltpu.CompilerParams(vmem_limit_bytes=vmem_limit),
    )(tok, gx_table, w_hh_t, w_fc_t, b_fc)
    return pred


def init_raw_params(key, vocab_size, embedding_dim, out_dim):
    """Raw parameters in PyTorch layout."""
    ks = jax.random.split(key, 7)
    s = 0.1
    return {
        "embedding": jax.random.normal(ks[0], (vocab_size, embedding_dim), jnp.float32) * s,
        "w_ih": jax.random.normal(ks[1], (4 * HIDDEN, embedding_dim), jnp.float32) * s,
        "w_hh": jax.random.normal(ks[2], (4 * HIDDEN, HIDDEN), jnp.float32) * s,
        "b_ih": jax.random.normal(ks[3], (4 * HIDDEN,), jnp.float32) * s,
        "b_hh": jax.random.normal(ks[4], (4 * HIDDEN,), jnp.float32) * s,
        "w_fc": jax.random.normal(ks[5], (out_dim, HIDDEN), jnp.float32) * s,
        "b_fc": jax.random.normal(ks[6], (out_dim,), jnp.float32) * s,
    }


def prepare_params(raw):
    """One-time offline fold of the embedding + input projection."""
    emb = raw["embedding"].astype(jnp.float32)                  # (vocab, E)
    w_ih = raw["w_ih"].astype(jnp.float32)                      # (4H, E)
    w_hh = raw["w_hh"].astype(jnp.float32)                      # (4H, H)
    bias = (raw["b_ih"] + raw["b_hh"]).astype(jnp.float32)      # (4H,)
    # Embedding lookup commutes with the input projection:
    #   embed(x) @ W_ih^T + b  ==  gather(emb @ W_ih^T + b, x)
    gx_table = emb @ w_ih.T + bias[None, :]                     # (vocab, 4H) f32 (exact)
    vocab, h4 = gx_table.shape
    return {
        "gx_table": gx_table.reshape(vocab, 1, h4),             # leading-axis gather layout
        "w_hh_t": w_hh.T.astype(MATMUL_DTYPE),                  # (H, 4H) bf16 MXU operand
        "w_fc_t": raw["w_fc"].T.astype(jnp.float32),            # (H, out)
        "b_fc": raw["b_fc"].reshape(1, -1).astype(jnp.float32), # (1, out)
    }


def lstm_reference(x_tokens, params):
    """Pure-JAX reference using the same prepared params (for tolerance checking)."""
    gx_table = params["gx_table"][:, 0, :]                      # (vocab, 4H)
    w_hh_t = params["w_hh_t"]
    w_fc_t = params["w_fc_t"]
    b_fc = params["b_fc"]
    H = w_hh_t.shape[0]
    B = x_tokens.shape[0]
    gx_all = jnp.take(gx_table, x_tokens, axis=0)               # (B, T, 4H)
    gx_tm = jnp.transpose(gx_all, (1, 0, 2))                    # (T, B, 4H)

    def step(carry, gx_t):
        h, c = carry
        gates = gx_t + jnp.dot(h.astype(w_hh_t.dtype), w_hh_t,
                               preferred_element_type=jnp.float32)
        i_g = jax.nn.sigmoid(gates[:, 0 * H:1 * H])
        f_g = jax.nn.sigmoid(gates[:, 1 * H:2 * H])
        g_g = jnp.tanh(gates[:, 2 * H:3 * H])
        o_g = jax.nn.sigmoid(gates[:, 3 * H:4 * H])
        c_new = f_g * c + i_g * g_g
        h_new = o_g * jnp.tanh(c_new)
        return (h_new, c_new), None

    init = (jnp.zeros((B, H), jnp.float32), jnp.zeros((B, H), jnp.float32))
    (h_fin, _), _ = lax.scan(step, init, gx_tm)
    return jnp.dot(h_fin, w_fc_t) + b_fc


if __name__ == "__main__":
    key = jax.random.PRNGKey(0)
    k_param, k_data = jax.random.split(key)

    vocab_size = 16       # input_size of nn.Embedding
    embedding_dim = 32
    out_dim = 4
    batch = 2
    seq = 8

    raw = init_raw_params(k_param, vocab_size, embedding_dim, out_dim)
    params = prepare_params(raw)
    x_tokens = jax.random.randint(k_data, (batch, seq), 0, vocab_size, dtype=jnp.int32)

    pred = jax.jit(lstm_forward)(x_tokens, params)
    pred = jax.block_until_ready(pred)
    assert pred.shape == (batch, out_dim), pred.shape

    ref = lstm_reference(x_tokens, params)
    max_err = float(jnp.max(jnp.abs(pred - ref)))
    assert max_err < 1e-2, f"kernel/reference mismatch: max abs err {max_err}"

    print("KERNEL_OK")
</pallas_src>

<mosaic_0001>
module attributes {stable_mosaic.version = 11 : i64} {
  func.func @lstm_fused_kernel(%arg0: memref<2x8xi32, #tpu.memory_space<smem>>, %arg1: memref<16x1x512xf32, #tpu.memory_space<vmem>>, %arg2: memref<128x512xbf16, #tpu.memory_space<vmem>>, %arg3: memref<128x4xf32, #tpu.memory_space<vmem>>, %arg4: memref<1x4xf32, #tpu.memory_space<vmem>>, %arg5: memref<2x4xf32, #tpu.memory_space<vmem>>) attributes {dimension_semantics = [], scalar_prefetch = 0 : i64, scratch_operands = 0 : i64, tpu.core_type = #tpu.core_type<tc>} {
    %cst = arith.constant 0.000000e+00 : f32
    %0 = vector.broadcast %cst : f32 to vector<2x128xf32>
    %cst_0 = arith.constant 0.000000e+00 : f32
    %1 = vector.broadcast %cst_0 : f32 to vector<2x128xf32>
    %c0_i32 = arith.constant 0 : i32
    %c0 = arith.constant 0 : index
    %2 = arith.index_cast %c0_i32 : i32 to index
    %3 = memref.load %arg0[%c0, %2] : memref<2x8xi32, #tpu.memory_space<smem>>
    %4 = arith.index_cast %3 : i32 to index
    %c0_1 = arith.constant 0 : index
    %c0_2 = arith.constant 0 : index
    %5 = vector.load %arg1[%4, %c0_1, %c0_2] : memref<16x1x512xf32, #tpu.memory_space<vmem>>, vector<1x1x512xf32>
    %6 = vector.shape_cast %5 : vector<1x1x512xf32> to vector<1x512xf32>
    %c1 = arith.constant 1 : index
    %7 = arith.index_cast %c0_i32 : i32 to index
    %8 = memref.load %arg0[%c1, %7] : memref<2x8xi32, #tpu.memory_space<smem>>
    %9 = arith.index_cast %8 : i32 to index
    %c0_3 = arith.constant 0 : index
    %c0_4 = arith.constant 0 : index
    %10 = vector.load %arg1[%9, %c0_3, %c0_4] : memref<16x1x512xf32, #tpu.memory_space<vmem>>, vector<1x1x512xf32>
    %11 = vector.shape_cast %10 : vector<1x1x512xf32> to vector<1x512xf32>
    %12 = tpu.concatenate %6, %11 in 0 : vector<1x512xf32>, vector<1x512xf32> -> vector<2x512xf32>
    %13 = arith.truncf %0 : vector<2x128xf32> to vector<2x128xbf16>
    %c0_5 = arith.constant 0 : index
    %c0_6 = arith.constant 0 : index
    %14 = vector.load %arg2[%c0_5, %c0_6] : memref<128x512xbf16, #tpu.memory_space<vmem>>, vector<128x512xbf16>
    %cst_7 = arith.constant dense<0.000000e+00> : vector<2x512xf32>
    %15 = tpu.matmul %13, %14, %cst_7 {dimension_numbers = #tpu.dot_dimension_numbers<[1], [0], [0], [1], [0, 0, 1, 1], [], []>} : vector<2x128xbf16>, vector<128x512xbf16>, vector<2x512xf32> -> vector<2x512xf32>
    %16 = arith.addf %12, %15 : vector<2x512xf32>
    %17 = vector.extract_strided_slice %16 {offsets = [0, 0], sizes = [2, 128], strides = [1, 1]} : vector<2x512xf32> to vector<2x128xf32>
    %18 = arith.negf %17 : vector<2x128xf32>
    %19 = math.exp %18 : vector<2x128xf32>
    %cst_8 = arith.constant 1.000000e+00 : f32
    %20 = vector.broadcast %cst_8 : f32 to vector<2x128xf32>
    %21 = arith.addf %20, %19 : vector<2x128xf32>
    %22 = arith.divf %20, %21 : vector<2x128xf32>
    %23 = vector.extract_strided_slice %16 {offsets = [0, 128], sizes = [2, 128], strides = [1, 1]} : vector<2x512xf32> to vector<2x128xf32>
    %24 = arith.negf %23 : vector<2x128xf32>
    %25 = math.exp %24 : vector<2x128xf32>
    %cst_9 = arith.constant 1.000000e+00 : f32
    %26 = vector.broadcast %cst_9 : f32 to vector<2x128xf32>
    %27 = arith.addf %26, %25 : vector<2x128xf32>
    %28 = arith.divf %26, %27 : vector<2x128xf32>
    %29 = vector.extract_strided_slice %16 {offsets = [0, 256], sizes = [2, 128], strides = [1, 1]} : vector<2x512xf32> to vector<2x128xf32>
    %30 = math.tanh %29 : vector<2x128xf32>
    %31 = vector.extract_strided_slice %16 {offsets = [0, 384], sizes = [2, 128], strides = [1, 1]} : vector<2x512xf32> to vector<2x128xf32>
    %32 = arith.negf %31 : vector<2x128xf32>
    %33 = math.exp %32 : vector<2x128xf32>
    %cst_10 = arith.constant 1.000000e+00 : f32
    %34 = vector.broadcast %cst_10 : f32 to vector<2x128xf32>
    %35 = arith.addf %34, %33 : vector<2x128xf32>
    %36 = arith.divf %34, %35 : vector<2x128xf32>
    %37 = arith.mulf %28, %1 : vector<2x128xf32>
    %38 = arith.mulf %22, %30 : vector<2x128xf32>
    %39 = arith.addf %37, %38 : vector<2x128xf32>
    %40 = math.tanh %39 : vector<2x128xf32>
    %41 = arith.mulf %36, %40 : vector<2x128xf32>
    %c1_i32 = arith.constant 1 : i32
    %c0_11 = arith.constant 0 : index
    %42 = arith.index_cast %c1_i32 : i32 to index
    %43 = memref.load %arg0[%c0_11, %42] : memref<2x8xi32, #tpu.memory_space<smem>>
    %44 = arith.index_cast %43 : i32 to index
    %c0_12 = arith.constant 0 : index
    %c0_13 = arith.constant 0 : index
    %45 = vector.load %arg1[%44, %c0_12, %c0_13] : memref<16x1x512xf32, #tpu.memory_space<vmem>>, vector<1x1x512xf32>
    %46 = vector.shape_cast %45 : vector<1x1x512xf32> to vector<1x512xf32>
    %c1_14 = arith.constant 1 : index
    %47 = arith.index_cast %c1_i32 : i32 to index
    %48 = memref.load %arg0[%c1_14, %47] : memref<2x8xi32, #tpu.memory_space<smem>>
    %49 = arith.index_cast %48 : i32 to index
    %c0_15 = arith.constant 0 : index
    %c0_16 = arith.constant 0 : index
    %50 = vector.load %arg1[%49, %c0_15, %c0_16] : memref<16x1x512xf32, #tpu.memory_space<vmem>>, vector<1x1x512xf32>
    %51 = vector.shape_cast %50 : vector<1x1x512xf32> to vector<1x512xf32>
    %52 = tpu.concatenate %46, %51 in 0 : vector<1x512xf32>, vector<1x512xf32> -> vector<2x512xf32>
    %53 = arith.truncf %41 : vector<2x128xf32> to vector<2x128xbf16>
    %c0_17 = arith.constant 0 : index
    %c0_18 = arith.constant 0 : index
    %54 = vector.load %arg2[%c0_17, %c0_18] : memref<128x512xbf16, #tpu.memory_space<vmem>>, vector<128x512xbf16>
    %cst_19 = arith.constant dense<0.000000e+00> : vector<2x512xf32>
    %55 = tpu.matmul %53, %54, %cst_19 {dimension_numbers = #tpu.dot_dimension_numbers<[1], [0], [0], [1], [0, 0, 1, 1], [], []>} : vector<2x128xbf16>, vector<128x512xbf16>, vector<2x512xf32> -> vector<2x512xf32>
    %56 = arith.addf %52, %55 : vector<2x512xf32>
    %57 = vector.extract_strided_slice %56 {offsets = [0, 0], sizes = [2, 128], strides = [1, 1]} : vector<2x512xf32> to vector<2x128xf32>
    %58 = arith.negf %57 : vector<2x128xf32>
    %59 = math.exp %58 : vector<2x128xf32>
    %cst_20 = arith.constant 1.000000e+00 : f32
    %60 = vector.broadcast %cst_20 : f32 to vector<2x128xf32>
    %61 = arith.addf %60, %59 : vector<2x128xf32>
    %62 = arith.divf %60, %61 : vector<2x128xf32>
    %63 = vector.extract_strided_slice %56 {offsets = [0, 128], sizes = [2, 128], strides = [1, 1]} : vector<2x512xf32> to vector<2x128xf32>
    %64 = arith.negf %63 : vector<2x128xf32>
    %65 = math.exp %64 : vector<2x128xf32>
    %cst_21 = arith.constant 1.000000e+00 : f32
    %66 = vector.broadcast %cst_21 : f32 to vector<2x128xf32>
    %67 = arith.addf %66, %65 : vector<2x128xf32>
    %68 = arith.divf %66, %67 : vector<2x128xf32>
    %69 = vector.extract_strided_slice %56 {offsets = [0, 256], sizes = [2, 128], strides = [1, 1]} : vector<2x512xf32> to vector<2x128xf32>
    %70 = math.tanh %69 : vector<2x128xf32>
    %71 = vector.extract_strided_slice %56 {offsets = [0, 384], sizes = [2, 128], strides = [1, 1]} : vector<2x512xf32> to vector<2x128xf32>
    %72 = arith.negf %71 : vector<2x128xf32>
    %73 = math.exp %72 : vector<2x128xf32>
    %cst_22 = arith.constant 1.000000e+00 : f32
    %74 = vector.broadcast %cst_22 : f32 to vector<2x128xf32>
    %75 = arith.addf %74, %73 : vector<2x128xf32>
    %76 = arith.divf %74, %75 : vector<2x128xf32>
    %77 = arith.mulf %68, %39 : vector<2x128xf32>
    %78 = arith.mulf %62, %70 : vector<2x128xf32>
    %79 = arith.addf %77, %78 : vector<2x128xf32>
    %80 = math.tanh %79 : vector<2x128xf32>
    %81 = arith.mulf %76, %80 : vector<2x128xf32>
    %c2_i32 = arith.constant 2 : i32
    %c0_23 = arith.constant 0 : index
    %82 = arith.index_cast %c2_i32 : i32 to index
    %83 = memref.load %arg0[%c0_23, %82] : memref<2x8xi32, #tpu.memory_space<smem>>
    %84 = arith.index_cast %83 : i32 to index
    %c0_24 = arith.constant 0 : index
    %c0_25 = arith.constant 0 : index
    %85 = vector.load %arg1[%84, %c0_24, %c0_25] : memref<16x1x512xf32, #tpu.memory_space<vmem>>, vector<1x1x512xf32>
    %86 = vector.shape_cast %85 : vector<1x1x512xf32> to vector<1x512xf32>
    %c1_26 = arith.constant 1 : index
    %87 = arith.index_cast %c2_i32 : i32 to index
    %88 = memref.load %arg0[%c1_26, %87] : memref<2x8xi32, #tpu.memory_space<smem>>
    %89 = arith.index_cast %88 : i32 to index
    %c0_27 = arith.constant 0 : index
    %c0_28 = arith.constant 0 : index
    %90 = vector.load %arg1[%89, %c0_27, %c0_28] : memref<16x1x512xf32, #tpu.memory_space<vmem>>, vector<1x1x512xf32>
    %91 = vector.shape_cast %90 : vector<1x1x512xf32> to vector<1x512xf32>
    %92 = tpu.concatenate %86, %91 in 0 : vector<1x512xf32>, vector<1x512xf32> -> vector<2x512xf32>
    %93 = arith.truncf %81 : vector<2x128xf32> to vector<2x128xbf16>
    %c0_29 = arith.constant 0 : index
    %c0_30 = arith.constant 0 : index
    %94 = vector.load %arg2[%c0_29, %c0_30] : memref<128x512xbf16, #tpu.memory_space<vmem>>, vector<128x512xbf16>
    %cst_31 = arith.constant dense<0.000000e+00> : vector<2x512xf32>
    %95 = tpu.matmul %93, %94, %cst_31 {dimension_numbers = #tpu.dot_dimension_numbers<[1], [0], [0], [1], [0, 0, 1, 1], [], []>} : vector<2x128xbf16>, vector<128x512xbf16>, vector<2x512xf32> -> vector<2x512xf32>
    %96 = arith.addf %92, %95 : vector<2x512xf32>
    %97 = vector.extract_strided_slice %96 {offsets = [0, 0], sizes = [2, 128], strides = [1, 1]} : vector<2x512xf32> to vector<2x128xf32>
    %98 = arith.negf %97 : vector<2x128xf32>
    %99 = math.exp %98 : vector<2x128xf32>
    %cst_32 = arith.constant 1.000000e+00 : f32
    %100 = vector.broadcast %cst_32 : f32 to vector<2x128xf32>
    %101 = arith.addf %100, %99 : vector<2x128xf32>
    %102 = arith.divf %100, %101 : vector<2x128xf32>
    %103 = vector.extract_strided_slice %96 {offsets = [0, 128], sizes = [2, 128], strides = [1, 1]} : vector<2x512xf32> to vector<2x128xf32>
    %104 = arith.negf %103 : vector<2x128xf32>
    %105 = math.exp %104 : vector<2x128xf32>
    %cst_33 = arith.constant 1.000000e+00 : f32
    %106 = vector.broadcast %cst_33 : f32 to vector<2x128xf32>
    %107 = arith.addf %106, %105 : vector<2x128xf32>
    %108 = arith.divf %106, %107 : vector<2x128xf32>
    %109 = vector.extract_strided_slice %96 {offsets = [0, 256], sizes = [2, 128], strides = [1, 1]} : vector<2x512xf32> to vector<2x128xf32>
    %110 = math.tanh %109 : vector<2x128xf32>
    %111 = vector.extract_strided_slice %96 {offsets = [0, 384], sizes = [2, 128], strides = [1, 1]} : vector<2x512xf32> to vector<2x128xf32>
    %112 = arith.negf %111 : vector<2x128xf32>
    %113 = math.exp %112 : vector<2x128xf32>
    %cst_34 = arith.constant 1.000000e+00 : f32
    %114 = vector.broadcast %cst_34 : f32 to vector<2x128xf32>
    %115 = arith.addf %114, %113 : vector<2x128xf32>
    %116 = arith.divf %114, %115 : vector<2x128xf32>
    %117 = arith.mulf %108, %79 : vector<2x128xf32>
    %118 = arith.mulf %102, %110 : vector<2x128xf32>
    %119 = arith.addf %117, %118 : vector<2x128xf32>
    %120 = math.tanh %119 : vector<2x128xf32>
    %121 = arith.mulf %116, %120 : vector<2x128xf32>
    %c3_i32 = arith.constant 3 : i32
    %c0_35 = arith.constant 0 : index
    %122 = arith.index_cast %c3_i32 : i32 to index
    %123 = memref.load %arg0[%c0_35, %122] : memref<2x8xi32, #tpu.memory_space<smem>>
    %124 = arith.index_cast %123 : i32 to index
    %c0_36 = arith.constant 0 : index
    %c0_37 = arith.constant 0 : index
    %125 = vector.load %arg1[%124, %c0_36, %c0_37] : memref<16x1x512xf32, #tpu.memory_space<vmem>>, vector<1x1x512xf32>
    %126 = vector.shape_cast %125 : vector<1x1x512xf32> to vector<1x512xf32>
    %c1_38 = arith.constant 1 : index
    %127 = arith.index_cast %c3_i32 : i32 to index
    %128 = memref.load %arg0[%c1_38, %127] : memref<2x8xi32, #tpu.memory_space<smem>>
    %129 = arith.index_cast %128 : i32 to index
    %c0_39 = arith.constant 0 : index
    %c0_40 = arith.constant 0 : index
    %130 = vector.load %arg1[%129, %c0_39, %c0_40] : memref<16x1x512xf32, #tpu.memory_space<vmem>>, vector<1x1x512xf32>
    %131 = vector.shape_cast %130 : vector<1x1x512xf32> to vector<1x512xf32>
    %132 = tpu.concatenate %126, %131 in 0 : vector<1x512xf32>, vector<1x512xf32> -> vector<2x512xf32>
    %133 = arith.truncf %121 : vector<2x128xf32> to vector<2x128xbf16>
    %c0_41 = arith.constant 0 : index
    %c0_42 = arith.constant 0 : index
    %134 = vector.load %arg2[%c0_41, %c0_42] : memref<128x512xbf16, #tpu.memory_space<vmem>>, vector<128x512xbf16>
    %cst_43 = arith.constant dense<0.000000e+00> : vector<2x512xf32>
    %135 = tpu.matmul %133, %134, %cst_43 {dimension_numbers = #tpu.dot_dimension_numbers<[1], [0], [0], [1], [0, 0, 1, 1], [], []>} : vector<2x128xbf16>, vector<128x512xbf16>, vector<2x512xf32> -> vector<2x512xf32>
    %136 = arith.addf %132, %135 : vector<2x512xf32>
    %137 = vector.extract_strided_slice %136 {offsets = [0, 0], sizes = [2, 128], strides = [1, 1]} : vector<2x512xf32> to vector<2x128xf32>
    %138 = arith.negf %137 : vector<2x128xf32>
    %139 = math.exp %138 : vector<2x128xf32>
    %cst_44 = arith.constant 1.000000e+00 : f32
    %140 = vector.broadcast %cst_44 : f32 to vector<2x128xf32>
    %141 = arith.addf %140, %139 : vector<2x128xf32>
    %142 = arith.divf %140, %141 : vector<2x128xf32>
    %143 = vector.extract_strided_slice %136 {offsets = [0, 128], sizes = [2, 128], strides = [1, 1]} : vector<2x512xf32> to vector<2x128xf32>
    %144 = arith.negf %143 : vector<2x128xf32>
    %145 = math.exp %144 : vector<2x128xf32>
    %cst_45 = arith.constant 1.000000e+00 : f32
    %146 = vector.broadcast %cst_45 : f32 to vector<2x128xf32>
    %147 = arith.addf %146, %145 : vector<2x128xf32>
    %148 = arith.divf %146, %147 : vector<2x128xf32>
    %149 = vector.extract_strided_slice %136 {offsets = [0, 256], sizes = [2, 128], strides = [1, 1]} : vector<2x512xf32> to vector<2x128xf32>
    %150 = math.tanh %149 : vector<2x128xf32>
    %151 = vector.extract_strided_slice %136 {offsets = [0, 384], sizes = [2, 128], strides = [1, 1]} : vector<2x512xf32> to vector<2x128xf32>
    %152 = arith.negf %151 : vector<2x128xf32>
    %153 = math.exp %152 : vector<2x128xf32>
    %cst_46 = arith.constant 1.000000e+00 : f32
    %154 = vector.broadcast %cst_46 : f32 to vector<2x128xf32>
    %155 = arith.addf %154, %153 : vector<2x128xf32>
    %156 = arith.divf %154, %155 : vector<2x128xf32>
    %157 = arith.mulf %148, %119 : vector<2x128xf32>
    %158 = arith.mulf %142, %150 : vector<2x128xf32>
    %159 = arith.addf %157, %158 : vector<2x128xf32>
    %160 = math.tanh %159 : vector<2x128xf32>
    %161 = arith.mulf %156, %160 : vector<2x128xf32>
    %c4_i32 = arith.constant 4 : i32
    %c0_47 = arith.constant 0 : index
    %162 = arith.index_cast %c4_i32 : i32 to index
    %163 = memref.load %arg0[%c0_47, %162] : memref<2x8xi32, #tpu.memory_space<smem>>
    %164 = arith.index_cast %163 : i32 to index
    %c0_48 = arith.constant 0 : index
    %c0_49 = arith.constant 0 : index
    %165 = vector.load %arg1[%164, %c0_48, %c0_49] : memref<16x1x512xf32, #tpu.memory_space<vmem>>, vector<1x1x512xf32>
    %166 = vector.shape_cast %165 : vector<1x1x512xf32> to vector<1x512xf32>
    %c1_50 = arith.constant 1 : index
    %167 = arith.index_cast %c4_i32 : i32 to index
    %168 = memref.load %arg0[%c1_50, %167] : memref<2x8xi32, #tpu.memory_space<smem>>
    %169 = arith.index_cast %168 : i32 to index
    %c0_51 = arith.constant 0 : index
    %c0_52 = arith.constant 0 : index
    %170 = vector.load %arg1[%169, %c0_51, %c0_52] : memref<16x1x512xf32, #tpu.memory_space<vmem>>, vector<1x1x512xf32>
    %171 = vector.shape_cast %170 : vector<1x1x512xf32> to vector<1x512xf32>
    %172 = tpu.concatenate %166, %171 in 0 : vector<1x512xf32>, vector<1x512xf32> -> vector<2x512xf32>
    %173 = arith.truncf %161 : vector<2x128xf32> to vector<2x128xbf16>
    %c0_53 = arith.constant 0 : index
    %c0_54 = arith.constant 0 : index
    %174 = vector.load %arg2[%c0_53, %c0_54] : memref<128x512xbf16, #tpu.memory_space<vmem>>, vector<128x512xbf16>
    %cst_55 = arith.constant dense<0.000000e+00> : vector<2x512xf32>
    %175 = tpu.matmul %173, %174, %cst_55 {dimension_numbers = #tpu.dot_dimension_numbers<[1], [0], [0], [1], [0, 0, 1, 1], [], []>} : vector<2x128xbf16>, vector<128x512xbf16>, vector<2x512xf32> -> vector<2x512xf32>
    %176 = arith.addf %172, %175 : vector<2x512xf32>
    %177 = vector.extract_strided_slice %176 {offsets = [0, 0], sizes = [2, 128], strides = [1, 1]} : vector<2x512xf32> to vector<2x128xf32>
    %178 = arith.negf %177 : vector<2x128xf32>
    %179 = math.exp %178 : vector<2x128xf32>
    %cst_56 = arith.constant 1.000000e+00 : f32
    %180 = vector.broadcast %cst_56 : f32 to vector<2x128xf32>
    %181 = arith.addf %180, %179 : vector<2x128xf32>
    %182 = arith.divf %180, %181 : vector<2x128xf32>
    %183 = vector.extract_strided_slice %176 {offsets = [0, 128], sizes = [2, 128], strides = [1, 1]} : vector<2x512xf32> to vector<2x128xf32>
    %184 = arith.negf %183 : vector<2x128xf32>
    %185 = math.exp %184 : vector<2x128xf32>
    %cst_57 = arith.constant 1.000000e+00 : f32
    %186 = vector.broadcast %cst_57 : f32 to vector<2x128xf32>
    %187 = arith.addf %186, %185 : vector<2x128xf32>
    %188 = arith.divf %186, %187 : vector<2x128xf32>
    %189 = vector.extract_strided_slice %176 {offsets = [0, 256], sizes = [2, 128], strides = [1, 1]} : vector<2x512xf32> to vector<2x128xf32>
    %190 = math.tanh %189 : vector<2x128xf32>
    %191 = vector.extract_strided_slice %176 {offsets = [0, 384], sizes = [2, 128], strides = [1, 1]} : vector<2x512xf32> to vector<2x128xf32>
    %192 = arith.negf %191 : vector<2x128xf32>
    %193 = math.exp %192 : vector<2x128xf32>
    %cst_58 = arith.constant 1.000000e+00 : f32
    %194 = vector.broadcast %cst_58 : f32 to vector<2x128xf32>
    %195 = arith.addf %194, %193 : vector<2x128xf32>
    %196 = arith.divf %194, %195 : vector<2x128xf32>
    %197 = arith.mulf %188, %159 : vector<2x128xf32>
    %198 = arith.mulf %182, %190 : vector<2x128xf32>
    %199 = arith.addf %197, %198 : vector<2x128xf32>
    %200 = math.tanh %199 : vector<2x128xf32>
    %201 = arith.mulf %196, %200 : vector<2x128xf32>
    %c5_i32 = arith.constant 5 : i32
    %c0_59 = arith.constant 0 : index
    %202 = arith.index_cast %c5_i32 : i32 to index
    %203 = memref.load %arg0[%c0_59, %202] : memref<2x8xi32, #tpu.memory_space<smem>>
    %204 = arith.index_cast %203 : i32 to index
    %c0_60 = arith.constant 0 : index
    %c0_61 = arith.constant 0 : index
    %205 = vector.load %arg1[%204, %c0_60, %c0_61] : memref<16x1x512xf32, #tpu.memory_space<vmem>>, vector<1x1x512xf32>
    %206 = vector.shape_cast %205 : vector<1x1x512xf32> to vector<1x512xf32>
    %c1_62 = arith.constant 1 : index
    %207 = arith.index_cast %c5_i32 : i32 to index
    %208 = memref.load %arg0[%c1_62, %207] : memref<2x8xi32, #tpu.memory_space<smem>>
    %209 = arith.index_cast %208 : i32 to index
    %c0_63 = arith.constant 0 : index
    %c0_64 = arith.constant 0 : index
    %210 = vector.load %arg1[%209, %c0_63, %c0_64] : memref<16x1x512xf32, #tpu.memory_space<vmem>>, vector<1x1x512xf32>
    %211 = vector.shape_cast %210 : vector<1x1x512xf32> to vector<1x512xf32>
    %212 = tpu.concatenate %206, %211 in 0 : vector<1x512xf32>, vector<1x512xf32> -> vector<2x512xf32>
    %213 = arith.truncf %201 : vector<2x128xf32> to vector<2x128xbf16>
    %c0_65 = arith.constant 0 : index
    %c0_66 = arith.constant 0 : index
    %214 = vector.load %arg2[%c0_65, %c0_66] : memref<128x512xbf16, #tpu.memory_space<vmem>>, vector<128x512xbf16>
    %cst_67 = arith.constant dense<0.000000e+00> : vector<2x512xf32>
    %215 = tpu.matmul %213, %214, %cst_67 {dimension_numbers = #tpu.dot_dimension_numbers<[1], [0], [0], [1], [0, 0, 1, 1], [], []>} : vector<2x128xbf16>, vector<128x512xbf16>, vector<2x512xf32> -> vector<2x512xf32>
    %216 = arith.addf %212, %215 : vector<2x512xf32>
    %217 = vector.extract_strided_slice %216 {offsets = [0, 0], sizes = [2, 128], strides = [1, 1]} : vector<2x512xf32> to vector<2x128xf32>
    %218 = arith.negf %217 : vector<2x128xf32>
    %219 = math.exp %218 : vector<2x128xf32>
    %cst_68 = arith.constant 1.000000e+00 : f32
    %220 = vector.broadcast %cst_68 : f32 to vector<2x128xf32>
    %221 = arith.addf %220, %219 : vector<2x128xf32>
    %222 = arith.divf %220, %221 : vector<2x128xf32>
    %223 = vector.extract_strided_slice %216 {offsets = [0, 128], sizes = [2, 128], strides = [1, 1]} : vector<2x512xf32> to vector<2x128xf32>
    %224 = arith.negf %223 : vector<2x128xf32>
    %225 = math.exp %224 : vector<2x128xf32>
    %cst_69 = arith.constant 1.000000e+00 : f32
    %226 = vector.broadcast %cst_69 : f32 to vector<2x128xf32>
    %227 = arith.addf %226, %225 : vector<2x128xf32>
    %228 = arith.divf %226, %227 : vector<2x128xf32>
    %229 = vector.extract_strided_slice %216 {offsets = [0, 256], sizes = [2, 128], strides = [1, 1]} : vector<2x512xf32> to vector<2x128xf32>
    %230 = math.tanh %229 : vector<2x128xf32>
    %231 = vector.extract_strided_slice %216 {offsets = [0, 384], sizes = [2, 128], strides = [1, 1]} : vector<2x512xf32> to vector<2x128xf32>
    %232 = arith.negf %231 : vector<2x128xf32>
    %233 = math.exp %232 : vector<2x128xf32>
    %cst_70 = arith.constant 1.000000e+00 : f32
    %234 = vector.broadcast %cst_70 : f32 to vector<2x128xf32>
    %235 = arith.addf %234, %233 : vector<2x128xf32>
    %236 = arith.divf %234, %235 : vector<2x128xf32>
    %237 = arith.mulf %228, %199 : vector<2x128xf32>
    %238 = arith.mulf %222, %230 : vector<2x128xf32>
    %239 = arith.addf %237, %238 : vector<2x128xf32>
    %240 = math.tanh %239 : vector<2x128xf32>
    %241 = arith.mulf %236, %240 : vector<2x128xf32>
    %c6_i32 = arith.constant 6 : i32
    %c0_71 = arith.constant 0 : index
    %242 = arith.index_cast %c6_i32 : i32 to index
    %243 = memref.load %arg0[%c0_71, %242] : memref<2x8xi32, #tpu.memory_space<smem>>
    %244 = arith.index_cast %243 : i32 to index
    %c0_72 = arith.constant 0 : index
    %c0_73 = arith.constant 0 : index
    %245 = vector.load %arg1[%244, %c0_72, %c0_73] : memref<16x1x512xf32, #tpu.memory_space<vmem>>, vector<1x1x512xf32>
    %246 = vector.shape_cast %245 : vector<1x1x512xf32> to vector<1x512xf32>
    %c1_74 = arith.constant 1 : index
    %247 = arith.index_cast %c6_i32 : i32 to index
    %248 = memref.load %arg0[%c1_74, %247] : memref<2x8xi32, #tpu.memory_space<smem>>
    %249 = arith.index_cast %248 : i32 to index
    %c0_75 = arith.constant 0 : index
    %c0_76 = arith.constant 0 : index
    %250 = vector.load %arg1[%249, %c0_75, %c0_76] : memref<16x1x512xf32, #tpu.memory_space<vmem>>, vector<1x1x512xf32>
    %251 = vector.shape_cast %250 : vector<1x1x512xf32> to vector<1x512xf32>
    %252 = tpu.concatenate %246, %251 in 0 : vector<1x512xf32>, vector<1x512xf32> -> vector<2x512xf32>
    %253 = arith.truncf %241 : vector<2x128xf32> to vector<2x128xbf16>
    %c0_77 = arith.constant 0 : index
    %c0_78 = arith.constant 0 : index
    %254 = vector.load %arg2[%c0_77, %c0_78] : memref<128x512xbf16, #tpu.memory_space<vmem>>, vector<128x512xbf16>
    %cst_79 = arith.constant dense<0.000000e+00> : vector<2x512xf32>
    %255 = tpu.matmul %253, %254, %cst_79 {dimension_numbers = #tpu.dot_dimension_numbers<[1], [0], [0], [1], [0, 0, 1, 1], [], []>} : vector<2x128xbf16>, vector<128x512xbf16>, vector<2x512xf32> -> vector<2x512xf32>
    %256 = arith.addf %252, %255 : vector<2x512xf32>
    %257 = vector.extract_strided_slice %256 {offsets = [0, 0], sizes = [2, 128], strides = [1, 1]} : vector<2x512xf32> to vector<2x128xf32>
    %258 = arith.negf %257 : vector<2x128xf32>
    %259 = math.exp %258 : vector<2x128xf32>
    %cst_80 = arith.constant 1.000000e+00 : f32
    %260 = vector.broadcast %cst_80 : f32 to vector<2x128xf32>
    %261 = arith.addf %260, %259 : vector<2x128xf32>
    %262 = arith.divf %260, %261 : vector<2x128xf32>
    %263 = vector.extract_strided_slice %256 {offsets = [0, 128], sizes = [2, 128], strides = [1, 1]} : vector<2x512xf32> to vector<2x128xf32>
    %264 = arith.negf %263 : vector<2x128xf32>
    %265 = math.exp %264 : vector<2x128xf32>
    %cst_81 = arith.constant 1.000000e+00 : f32
    %266 = vector.broadcast %cst_81 : f32 to vector<2x128xf32>
    %267 = arith.addf %266, %265 : vector<2x128xf32>
    %268 = arith.divf %266, %267 : vector<2x128xf32>
    %269 = vector.extract_strided_slice %256 {offsets = [0, 256], sizes = [2, 128], strides = [1, 1]} : vector<2x512xf32> to vector<2x128xf32>
    %270 = math.tanh %269 : vector<2x128xf32>
    %271 = vector.extract_strided_slice %256 {offsets = [0, 384], sizes = [2, 128], strides = [1, 1]} : vector<2x512xf32> to vector<2x128xf32>
    %272 = arith.negf %271 : vector<2x128xf32>
    %273 = math.exp %272 : vector<2x128xf32>
    %cst_82 = arith.constant 1.000000e+00 : f32
    %274 = vector.broadcast %cst_82 : f32 to vector<2x128xf32>
    %275 = arith.addf %274, %273 : vector<2x128xf32>
    %276 = arith.divf %274, %275 : vector<2x128xf32>
    %277 = arith.mulf %268, %239 : vector<2x128xf32>
    %278 = arith.mulf %262, %270 : vector<2x128xf32>
    %279 = arith.addf %277, %278 : vector<2x128xf32>
    %280 = math.tanh %279 : vector<2x128xf32>
    %281 = arith.mulf %276, %280 : vector<2x128xf32>
    %c7_i32 = arith.constant 7 : i32
    %c0_83 = arith.constant 0 : index
    %282 = arith.index_cast %c7_i32 : i32 to index
    %283 = memref.load %arg0[%c0_83, %282] : memref<2x8xi32, #tpu.memory_space<smem>>
    %284 = arith.index_cast %283 : i32 to index
    %c0_84 = arith.constant 0 : index
    %c0_85 = arith.constant 0 : index
    %285 = vector.load %arg1[%284, %c0_84, %c0_85] : memref<16x1x512xf32, #tpu.memory_space<vmem>>, vector<1x1x512xf32>
    %286 = vector.shape_cast %285 : vector<1x1x512xf32> to vector<1x512xf32>
    %c1_86 = arith.constant 1 : index
    %287 = arith.index_cast %c7_i32 : i32 to index
    %288 = memref.load %arg0[%c1_86, %287] : memref<2x8xi32, #tpu.memory_space<smem>>
    %289 = arith.index_cast %288 : i32 to index
    %c0_87 = arith.constant 0 : index
    %c0_88 = arith.constant 0 : index
    %290 = vector.load %arg1[%289, %c0_87, %c0_88] : memref<16x1x512xf32, #tpu.memory_space<vmem>>, vector<1x1x512xf32>
    %291 = vector.shape_cast %290 : vector<1x1x512xf32> to vector<1x512xf32>
    %292 = tpu.concatenate %286, %291 in 0 : vector<1x512xf32>, vector<1x512xf32> -> vector<2x512xf32>
    %293 = arith.truncf %281 : vector<2x128xf32> to vector<2x128xbf16>
    %c0_89 = arith.constant 0 : index
    %c0_90 = arith.constant 0 : index
    %294 = vector.load %arg2[%c0_89, %c0_90] : memref<128x512xbf16, #tpu.memory_space<vmem>>, vector<128x512xbf16>
    %cst_91 = arith.constant dense<0.000000e+00> : vector<2x512xf32>
    %295 = tpu.matmul %293, %294, %cst_91 {dimension_numbers = #tpu.dot_dimension_numbers<[1], [0], [0], [1], [0, 0, 1, 1], [], []>} : vector<2x128xbf16>, vector<128x512xbf16>, vector<2x512xf32> -> vector<2x512xf32>
    %296 = arith.addf %292, %295 : vector<2x512xf32>
    %297 = vector.extract_strided_slice %296 {offsets = [0, 0], sizes = [2, 128], strides = [1, 1]} : vector<2x512xf32> to vector<2x128xf32>
    %298 = arith.negf %297 : vector<2x128xf32>
    %299 = math.exp %298 : vector<2x128xf32>
    %cst_92 = arith.constant 1.000000e+00 : f32
    %300 = vector.broadcast %cst_92 : f32 to vector<2x128xf32>
    %301 = arith.addf %300, %299 : vector<2x128xf32>
    %302 = arith.divf %300, %301 : vector<2x128xf32>
    %303 = vector.extract_strided_slice %296 {offsets = [0, 128], sizes = [2, 128], strides = [1, 1]} : vector<2x512xf32> to vector<2x128xf32>
    %304 = arith.negf %303 : vector<2x128xf32>
    %305 = math.exp %304 : vector<2x128xf32>
    %cst_93 = arith.constant 1.000000e+00 : f32
    %306 = vector.broadcast %cst_93 : f32 to vector<2x128xf32>
    %307 = arith.addf %306, %305 : vector<2x128xf32>
    %308 = arith.divf %306, %307 : vector<2x128xf32>
    %309 = vector.extract_strided_slice %296 {offsets = [0, 256], sizes = [2, 128], strides = [1, 1]} : vector<2x512xf32> to vector<2x128xf32>
    %310 = math.tanh %309 : vector<2x128xf32>
    %311 = vector.extract_strided_slice %296 {offsets = [0, 384], sizes = [2, 128], strides = [1, 1]} : vector<2x512xf32> to vector<2x128xf32>
    %312 = arith.negf %311 : vector<2x128xf32>
    %313 = math.exp %312 : vector<2x128xf32>
    %cst_94 = arith.constant 1.000000e+00 : f32
    %314 = vector.broadcast %cst_94 : f32 to vector<2x128xf32>
    %315 = arith.addf %314, %313 : vector<2x128xf32>
    %316 = arith.divf %314, %315 : vector<2x128xf32>
    %317 = arith.mulf %308, %279 : vector<2x128xf32>
    %318 = arith.mulf %302, %310 : vector<2x128xf32>
    %319 = arith.addf %317, %318 : vector<2x128xf32>
    %320 = math.tanh %319 : vector<2x128xf32>
    %321 = arith.mulf %316, %320 : vector<2x128xf32>
    %c8_i32 = arith.constant 8 : i32
    %c0_95 = arith.constant 0 : index
    %c0_96 = arith.constant 0 : index
    %322 = vector.load %arg3[%c0_95, %c0_96] : memref<128x4xf32, #tpu.memory_space<vmem>>, vector<128x4xf32>
    %cst_97 = arith.constant dense<0.000000e+00> : vector<2x4xf32>
    %323 = tpu.matmul %321, %322, %cst_97 {dimension_numbers = #tpu.dot_dimension_numbers<[1], [0], [0], [1], [0, 0, 1, 1], [], []>} : vector<2x128xf32>, vector<128x4xf32>, vector<2x4xf32> -> vector<2x4xf32>
    %c0_98 = arith.constant 0 : index
    %c0_99 = arith.constant 0 : index
    %324 = vector.load %arg4[%c0_98, %c0_99] : memref<1x4xf32, #tpu.memory_space<vmem>>, vector<1x4xf32>
    %325 = vector.broadcast %324 : vector<1x4xf32> to vector<2x4xf32>
    %326 = arith.addf %323, %325 : vector<2x4xf32>
    %c0_100 = arith.constant 0 : index
    %c0_101 = arith.constant 0 : index
    %327 = vector.load %arg5[%c0_100, %c0_101] : memref<2x4xf32, #tpu.memory_space<vmem>>, vector<2x4xf32>
    tpu.vector_store %arg5[%c0_100, %c0_101], %326 {strides = array<i32>} : memref<2x4xf32, #tpu.memory_space<vmem>>, vector<2x4xf32>,
    return
  }
}

</mosaic_0001>

<bundles_post_ra>
// kernel: lstm_forward.1
= control target key start
LH: loop header
LB: loop body
LE: loop exit
PB: predicated region body
PF: predicated region fallthrough
CT: control target
= control target key end

     0   :  { %10 = vsyncpa [#allocation5], 0  ;;  %s2475_s0 = inlined_call_operand.vmem [shape: s32[2,8], index: 0, kind: input, shape index: {}]   ;;  %s2476_s1 = inlined_call_operand.vmem [shape: f32[16,1,512], index: 1, kind: input, shape index: {}]   ;;  %s2477_s2 = inlined_call_operand.hbm [shape: bf16[128,512], index: 2, kind: input, shape index: {}]   ;;  %s2478_s3 = inlined_call_operand.vmem [shape: f32[128,4], index: 3, kind: input, shape index: {}]   ;;  %s2479_s4 = inlined_call_operand.vmem [shape: f32[1,4], index: 4, kind: input, shape index: {}]   ;;  %s2480_s5 = inlined_call_operand.hbm [shape: f32[2,4], index: 5, kind: output, shape index: {}]  }
   0x1   :  { %11 = vsyncpa [#allocation3], 0 }
   0x2   :  { %12 = vsyncpa [#allocation4], 0  ;;  %s18_s20 = sshll.u32 %s2475_s0, 4  ;;  %s28_s23 = sshll.u32 %s2477_s2, 4  ;;  %s19_s20 = int_to_ptr.vmem [resolvable:$true] %s18_s20  ;;  %s29_s23 = int_to_ptr.hbm [resolvable:$true] %s28_s23 }
   0x3   :  { %s1951_s24 = smov [#allocation2]   ;;  %s1952_s25 = smov [#allocation6]  }
   0x4   :  { %21 = dma.vmem_to_smem %s19_s20, 32, %s1951_s24, [#allocation5]  }
   0x5   :  { %s30_s26 = sshll.u32 %s1952_s25, 4  ;;  %s1953_s27 = smov 256   ;;  %s31_s26 = int_to_ptr.vmem [resolvable:$true] %s30_s26 }
   0x6   :  { %s1954_s28 = smov 16  }
   0x7   :  { %36 = dma.hbm_to_vmem [thread:$0]  %s29_s23, 4096, %s31_s26, [#allocation3], %s1953_s27, %s1953_s27, %s1954_s28  }
   0x8   :  { %1945 = dma.done.wait [#allocation5], 32  }
   0x9   :  { %1946 = vsyncadd [#allocation5], 4294967264 }
   0xa   :  { %1947 = dma.done.wait [#allocation3], 4096  }
   0xb   :  { %1948 = vsyncadd [#allocation3], 4294963200 }
   0xc   :  { %49 = sfence }
   0xd   :  { %v1652_v0 = vld [vmem:[#allocation6 + $0xe0] sm:$0xf]  ;;  %v1748_v1 = vld [vmem:[#allocation6 + $0xec] sm:$0xf0]  ;;  %v1746_v2 = vld [vmem:[#allocation6 + $0xe4] sm:$0xf] }
   0xe   :  { %v1993_v3 = vor.u32 %v1748_v1, %v1652_v0  ;;  %v1654_v4 = vld [vmem:[#allocation6 + $0xf0] sm:$0xf0]  ;;  %v1747_v5 = vld [vmem:[#allocation6 + $0xec] sm:$0xf]  ;;  %v1662_v6 = vld [vmem:[#allocation6 + $0xf8] sm:$0xf0] }
   0xf   :  { %v1995_v7 = vor.u32 %v1746_v2, %v1654_v4  ;;  %v1997_v8 = vor.u32 %v1747_v5, %v1662_v6  ;;  %v1636_v9 = vld [vmem:[#allocation6 + $0xc0] sm:$0xf]  ;;  %v1744_v10 = vld [vmem:[#allocation6 + $0xcc] sm:$0xf0]  ;;  %v1742_v11 = vld [vmem:[#allocation6 + $0xc4] sm:$0xf] }
  0x10   :  { %274 = vmatpush.bf16.msra.mxu0 %v1993_v3  ;;  %v2000_v12 = vor.u32 %v1744_v10, %v1636_v9  ;;  %v1638_v13 = vld [vmem:[#allocation6 + $0xd0] sm:$0xf0]  ;;  %v1743_v14 = vld [vmem:[#allocation6 + $0xcc] sm:$0xf]  ;;  %v1646_v15 = vld [vmem:[#allocation6 + $0xd8] sm:$0xf0] }
  0x11   :  { %287 = vmatpush.bf16.msra.mxu1 %v1995_v7  ;;  %313 = vmatpush.bf16.msra.mxu3 %v1997_v8  ;;  %v2004_v16 = vor.u32 %v1742_v11, %v1638_v13  ;;  %v2006_v17 = vor.u32 %v1743_v14, %v1646_v15  ;;  %v1660_v18 = vld [vmem:[#allocation6 + $0xe8] sm:$0xf]  ;;  %v1749_v19 = vld [vmem:[#allocation6 + $0xf4] sm:$0xf0]  ;;  %v1620_v20 = vld [vmem:[#allocation6 + $0xa0] sm:$0xf] }
  0x12   :  { %v2008_v21 = vor.u32 %v1749_v19, %v1660_v18  ;;  %v1740_v22 = vld [vmem:[#allocation6 + $0xac] sm:$0xf0]  ;;  %v1738_v23 = vld [vmem:[#allocation6 + $0xa4] sm:$0xf]  ;;  %v1622_v24 = vld [vmem:[#allocation6 + $0xb0] sm:$0xf0] }
  0x13   :  { %v1739_v25 = vld [vmem:[#allocation6 + $0xac] sm:$0xf]  ;;  %v1630_v26 = vld [vmem:[#allocation6 + $0xb8] sm:$0xf0]  ;;  %v1644_v27 = vld [vmem:[#allocation6 + $0xc8] sm:$0xf]  ;;  %v2012_v28 = vor.u32 %v1740_v22, %v1620_v20  ;;  %v2016_v32 = vor.u32 %v1738_v23, %v1622_v24 }
  0x14   :  { %275 = vmatpush.bf16.msra.mxu0 %v2000_v12  ;;  %300 = vmatpush.bf16.msra.mxu2 %v2008_v21  ;;  %v1745_v29 = vld [vmem:[#allocation6 + $0xd4] sm:$0xf0]  ;;  %v1604_v30 = vld [vmem:[#allocation6 + $0x80] sm:$0xf]  ;;  %v1736_v31 = vld [vmem:[#allocation6 + $0x8c] sm:$0xf0]  ;;  %v2018_v33 = vor.u32 %v1739_v25, %v1630_v26 }
  0x15   :  { %288 = vmatpush.bf16.msra.mxu1 %v2004_v16  ;;  %314 = vmatpush.bf16.msra.mxu3 %v2006_v17  ;;  %v2020_v34 = vor.u32 %v1745_v29, %v1644_v27  ;;  %v1734_v35 = vld [vmem:[#allocation6 + $0x84] sm:$0xf]  ;;  %v1606_v36 = vld [vmem:[#allocation6 + $0x90] sm:$0xf0]  ;;  %v1735_v37 = vld [vmem:[#allocation6 + $0x8c] sm:$0xf]  ;;  %v2024_v41 = vor.u32 %v1736_v31, %v1604_v30 }
  0x16   :  { %v1614_v38 = vld [vmem:[#allocation6 + $0x98] sm:$0xf0]  ;;  %v1628_v39 = vld [vmem:[#allocation6 + $0xa8] sm:$0xf]  ;;  %v1741_v40 = vld [vmem:[#allocation6 + $0xb4] sm:$0xf0]  ;;  %v2030_v45 = vor.u32 %v1734_v35, %v1606_v36 }
  0x17   :  { %v2026_v42 = vor.u32 %v1741_v40, %v1628_v39  ;;  %v1588_v43 = vld [vmem:[#allocation6 + $0x60] sm:$0xf]  ;;  %v1732_v44 = vld [vmem:[#allocation6 + $0x6c] sm:$0xf0]  ;;  %v2032_v46 = vor.u32 %v1735_v37, %v1614_v38  ;;  %v1730_v47 = vld [vmem:[#allocation6 + $0x64] sm:$0xf] }
  0x18   :  { %276 = vmatpush.bf16.msra.mxu0 %v2012_v28  ;;  %301 = vmatpush.bf16.msra.mxu2 %v2020_v34  ;;  %v1612_v48 = vld [vmem:[#allocation6 + $0x88] sm:$0xf]  ;;  %v1737_v49 = vld [vmem:[#allocation6 + $0x94] sm:$0xf0]  ;;  %v1590_v50 = vld [vmem:[#allocation6 + $0x70] sm:$0xf0]  ;;  %v2036_v53 = vor.u32 %v1732_v44, %v1588_v43 }
  0x19   :  { %289 = vmatpush.bf16.msra.mxu1 %v2016_v32  ;;  %315 = vmatpush.bf16.msra.mxu3 %v2018_v33  ;;  %v1731_v51 = vld [vmem:[#allocation6 + $0x6c] sm:$0xf]  ;;  %v1598_v52 = vld [vmem:[#allocation6 + $0x78] sm:$0xf0]  ;;  %v2038_v54 = vor.u32 %v1737_v49, %v1612_v48  ;;  %v1572_v55 = vld [vmem:[#allocation6 + $0x40] sm:$0xf]  ;;  %v2042_v57 = vor.u32 %v1730_v47, %v1590_v50 }
  0x1a   :  { %v1728_v56 = vld [vmem:[#allocation6 + $0x4c] sm:$0xf0]  ;;  %v2044_v58 = vor.u32 %v1731_v51, %v1598_v52  ;;  %v1726_v59 = vld [vmem:[#allocation6 + $0x44] sm:$0xf]  ;;  %v1596_v60 = vld [vmem:[#allocation6 + $0x68] sm:$0xf] }
  0x1b   :  { %v1733_v61 = vld [vmem:[#allocation6 + $0x74] sm:$0xf0]  ;;  %v1574_v62 = vld [vmem:[#allocation6 + $0x50] sm:$0xf0]  ;;  %v1727_v63 = vld [vmem:[#allocation6 + $0x4c] sm:$0xf]  ;;  %v2048_v1 = vor.u32 %v1728_v56, %v1572_v55 }
  0x1c   :  { %277 = vmatpush.bf16.msra.mxu0 %v2024_v41  ;;  %302 = vmatpush.bf16.msra.mxu2 %v2026_v42  ;;  %v1582_v0 = vld [vmem:[#allocation6 + $0x58] sm:$0xf0]  ;;  %v2050_v2 = vor.u32 %v1733_v61, %v1596_v60  ;;  %v1556_v4 = vld [vmem:[#allocation6 + $0x20] sm:$0xf]  ;;  %v1724_v5 = vld [vmem:[#allocation6 + $0x2c] sm:$0xf0]  ;;  %v2054_v6 = vor.u32 %v1726_v59, %v1574_v62 }
  0x1d   :  { %290 = vmatpush.bf16.msra.mxu1 %v2030_v45  ;;  %316 = vmatpush.bf16.msra.mxu3 %v2032_v46  ;;  %v2056_v9 = vor.u32 %v1727_v63, %v1582_v0  ;;  %v1722_v10 = vld [vmem:[#allocation6 + $0x24] sm:$0xf]  ;;  %v1580_v11 = vld [vmem:[#allocation6 + $0x48] sm:$0xf]  ;;  %v1729_v13 = vld [vmem:[#allocation6 + $0x54] sm:$0xf0]  ;;  %v2060_v19 = vor.u32 %v1724_v5, %v1556_v4 }
  0x1e   :  { %v1558_v14 = vld [vmem:[#allocation6 + $0x30] sm:$0xf0]  ;;  %v1723_v15 = vld [vmem:[#allocation6 + $0x2c] sm:$0xf]  ;;  %v1566_v18 = vld [vmem:[#allocation6 + $0x38] sm:$0xf0]  ;;  %v2062_v20 = vor.u32 %v1729_v13, %v1580_v11 }
  0x1f   :  { %v1540_v22 = vld [vmem:[#allocation6] sm:$0xf]  ;;  %v1720_v23 = vld [vmem:[#allocation6 + $0xc] sm:$0xf0]  ;;  %v2066_v24 = vor.u32 %v1722_v10, %v1558_v14  ;;  %v2068_v25 = vor.u32 %v1723_v15, %v1566_v18  ;;  %v1718_v26 = vld [vmem:[#allocation6 + $0x4] sm:$0xf] }
  0x20   :  { %278 = vmatpush.bf16.msra.mxu0 %v2036_v53  ;;  %303 = vmatpush.bf16.msra.mxu2 %v2038_v54  ;;  %v1564_v27 = vld [vmem:[#allocation6 + $0x28] sm:$0xf]  ;;  %v1725_v29 = vld [vmem:[#allocation6 + $0x34] sm:$0xf0]  ;;  %v1542_v30 = vld [vmem:[#allocation6 + $0x10] sm:$0xf0]  ;;  %v2072_v36 = vor.u32 %v1720_v23, %v1540_v22 }
  0x21   :  { %291 = vmatpush.bf16.msra.mxu1 %v2042_v57  ;;  %317 = vmatpush.bf16.msra.mxu3 %v2044_v58  ;;  %v1719_v31 = vld [vmem:[#allocation6 + $0xc] sm:$0xf]  ;;  %v1550_v35 = vld [vmem:[#allocation6 + $0x18] sm:$0xf0]  ;;  %v2074_v37 = vor.u32 %v1725_v29, %v1564_v27  ;;  %v2078_v38 = vor.u32 %v1718_v26, %v1542_v30  ;;  %v1548_v40 = vld [vmem:[#allocation6 + $0x8] sm:$0xf] }
  0x22   :  { %v2080_v39 = vor.u32 %v1719_v31, %v1550_v35  ;;  %v1721_v43 = vld [vmem:[#allocation6 + $0x14] sm:$0xf0]  ;;  %v1955_v47 = vmov 0   ;;  %s51_s0 = sld [smem:[#allocation2]]  ;;  %vm77_vm0 = vcmask 1040384  }
  0x23   :  { %v2086_v44 = vor.u32 %v1721_v43, %v1548_v40  ;;  %s1536_s2 = sld [smem:[#allocation2 + $0x80]] }
  0x24   :  { %279 = vmatpush.bf16.msra.mxu0 %v2048_v1  ;;  %304 = vmatpush.bf16.msra.mxu2 %v2050_v2  ;;  %s1669_s12 = sld [smem:[#allocation2 + $0x1]] }
  0x25   :  { %292 = vmatpush.bf16.msra.mxu1 %v2054_v6  ;;  %318 = vmatpush.bf16.msra.mxu3 %v2056_v9  ;;  %s1671_s13 = sld [smem:[#allocation2 + $0x81]] }
  0x26   :  { %s1676_s22 = sld [smem:[#allocation2 + $0x2]] }
  0x27   :  { %s1678_s23 = sld [smem:[#allocation2 + $0x82]] }
  0x28   :  { %280 = vmatpush.bf16.msra.mxu0 %v2060_v19  ;;  %305 = vmatpush.bf16.msra.mxu2 %v2062_v20  ;;  %s1535_s29 = sshll.u32 %s51_s0, 2  ;;  %s1685_s6 = sld [smem:[#allocation2 + $0x83]] }
  0x29   :  { %293 = vmatpush.bf16.msra.mxu1 %v2066_v24  ;;  %319 = vmatpush.bf16.msra.mxu3 %v2068_v25  ;;  %s1537_s30 = sshll.u32 %s1536_s2, 2  ;;  %s53_s8 = scalar_lea.vmem %s2476_s1, %s1535_s29 }
  0x2a   :  { %s57_s11 = scalar_lea.vmem %s2476_s1, %s1537_s30  ;;  %v54_v48 = vld [vmem:[%s53_s8] sm:$0xf]  ;;  %s1670_s14 = sshll.u32 %s1669_s12, 2 }
  0x2b   :  { %v58_v49 = vld [vmem:[%s57_s11] sm:$0xf]  ;;  %v60_v50 = vperm.slane %v54_v48, 0  ;;  %v61_v52 = vperm.slane %v54_v48, 1  ;;  %v63_v63 = vperm.slane %v54_v48, 3  ;;  %v62_v26 = vperm.slane %v54_v48, 2  ;;  %s395_s18 = scalar_lea.vmem %s2476_s1, %s1670_s14 }
  0x2c   :  { %281 = vmatpush.bf16.msra.mxu0 %v2072_v36  ;;  %306 = vmatpush.bf16.msra.mxu2 %v2074_v37  ;;  %v69_v51 = vperm.slane %v58_v49, 0  ;;  %v70_v55 = vperm.slane %v58_v49, 1  ;;  %v72_v0 = vperm.slane %v58_v49, 3  ;;  %v71_v27 = vperm.slane %v58_v49, 2  ;;  %s1672_s15 = sshll.u32 %s1671_s13, 2  ;;  %s1677_s24 = sshll.u32 %s1676_s22, 2 }
  0x2d   :  { %294 = vmatpush.bf16.msra.mxu1 %v2078_v38  ;;  %320 = vmatpush.bf16.msra.mxu3 %v2080_v39  ;;  %s399_s21 = scalar_lea.vmem %s2476_s1, %s1672_s15  ;;  %s1679_s25 = sshll.u32 %s1678_s23, 2 }
  0x2e   :  { %v78_v56 = vsel %vm77_vm0, %v60_v50, %v69_v51  ;;  %v79_v59 = vsel %vm77_vm0, %v61_v52, %v70_v55  ;;  %v81_v11 = vsel %vm77_vm0, %v63_v63, %v72_v0  ;;  %v80_v40 = vsel %vm77_vm0, %v62_v26, %v71_v27  ;;  %s545_s28 = scalar_lea.vmem %s2476_s1, %s1677_s24  ;;  %s549_s29 = scalar_lea.vmem %s2476_s1, %s1679_s25 }
  0x2f   :  { %282 = vmatmul.bf16.vlgmr.msra.gmra.mxu0 %v1955_v47  ;;  %s1683_s30 = sld [smem:[#allocation2 + $0x3]]  ;;  %s1686_s8 = sshll.u32 %s1685_s6, 2 }
  0x30   :  { %424 = vmatpush.bf16.msrb.mxu0 %v1993_v3  ;;  %295 = vmatmul.bf16.vlgmr.msra.gmra.mxu1 %v1955_v47  ;;  %s699_s14 = scalar_lea.vmem %s2476_s1, %s1686_s8  ;;  %s1690_s15 = sld [smem:[#allocation2 + $0x4]] }
  0x31   :  { %437 = vmatpush.bf16.msrb.mxu1 %v1995_v7  ;;  %463 = vmatpush.bf16.msrb.mxu3 %v1997_v8  ;;  %s1692_s16 = sld [smem:[#allocation2 + $0x84]]  ;;  %s1956_s6 = smov [#allocation7]  }
  0x32   :  { %321 = vmatmul.bf16.vlgmr.msra.gmra.mxu3 %v1955_v47  ;;  %307 = vmatpush.bf16.msra.mxu2 %v2086_v44  ;;  %s1697_s25 = sld [smem:[#allocation2 + $0x5]] }
  0x33   :  { %s1699_s26 = sld [smem:[#allocation2 + $0x85]] }
  0x34   :  { %425 = vmatpush.bf16.msrb.mxu0 %v2000_v12  ;;  %s1704_s8 = sld [smem:[#allocation2 + $0x6]] }
  0x35   :  { %438 = vmatpush.bf16.msrb.mxu1 %v2004_v16  ;;  %464 = vmatpush.bf16.msrb.mxu3 %v2006_v17  ;;  %s1684_s7 = sshll.u32 %s1683_s30, 2  ;;  %s1706_s9 = sld [smem:[#allocation2 + $0x86]] }
  0x36   :  { %450 = vmatpush.bf16.msrb.mxu2 %v2008_v21  ;;  %s695_s11 = scalar_lea.vmem %s2476_s1, %s1684_s7  ;;  %s1691_s17 = sshll.u32 %s1690_s15, 2 }
  0x37   :  { %308 = vmatmul.bf16.vlgmr.msra.gmra.mxu2 %v1955_v47  ;;  %s1713_s19 = sld [smem:[#allocation2 + $0x87]] }
  0x38   :  { %426 = vmatpush.bf16.msrb.mxu0 %v2012_v28  ;;  %s1698_s27 = sshll.u32 %s1697_s25, 2 }
  0x39   :  { %439 = vmatpush.bf16.msrb.mxu1 %v2016_v32  ;;  %465 = vmatpush.bf16.msrb.mxu3 %v2018_v33 }
  0x3a   :  { %451 = vmatpush.bf16.msrb.mxu2 %v2020_v34  ;;  %s1705_s10 = sshll.u32 %s1704_s8, 2 }
  0x3c   :  { %427 = vmatpush.bf16.msrb.mxu0 %v2024_v41 }
  0x3d   :  { %440 = vmatpush.bf16.msrb.mxu1 %v2030_v45  ;;  %466 = vmatpush.bf16.msrb.mxu3 %v2032_v46  ;;  %s1714_s25 = sshll.u32 %s1713_s19, 2 }
  0x3e   :  { %452 = vmatpush.bf16.msrb.mxu2 %v2026_v42  ;;  %s1299_s8 = scalar_lea.vmem %s2476_s1, %s1714_s25 }
  0x40   :  { %428 = vmatpush.bf16.msrb.mxu0 %v2036_v53 }
  0x41   :  { %441 = vmatpush.bf16.msrb.mxu1 %v2042_v57  ;;  %467 = vmatpush.bf16.msrb.mxu3 %v2044_v58 }
  0x42   :  { %453 = vmatpush.bf16.msrb.mxu2 %v2038_v54 }
  0x44   :  { %429 = vmatpush.bf16.msrb.mxu0 %v2048_v1 }
  0x45   :  { %442 = vmatpush.bf16.msrb.mxu1 %v2054_v6  ;;  %468 = vmatpush.bf16.msrb.mxu3 %v2056_v9 }
  0x46   :  { %454 = vmatpush.bf16.msrb.mxu2 %v2050_v2 }
  0x48   :  { %430 = vmatpush.bf16.msrb.mxu0 %v2060_v19 }
  0x49   :  { %443 = vmatpush.bf16.msrb.mxu1 %v2066_v24  ;;  %469 = vmatpush.bf16.msrb.mxu3 %v2068_v25 }
  0x4a   :  { %455 = vmatpush.bf16.msrb.mxu2 %v2062_v20 }
  0x4c   :  { %431 = vmatpush.bf16.msrb.mxu0 %v2072_v36 }
  0x4d   :  { %444 = vmatpush.bf16.msrb.mxu1 %v2078_v38  ;;  %470 = vmatpush.bf16.msrb.mxu3 %v2080_v39 }
  0x4e   :  { %456 = vmatpush.bf16.msrb.mxu2 %v2074_v37 }
  0x50   :  { %574 = vmatpush.bf16.msra.mxu0 %v1993_v3 }
  0x51   :  { %587 = vmatpush.bf16.msra.mxu1 %v1995_v7  ;;  %613 = vmatpush.bf16.msra.mxu3 %v1997_v8 }
  0x52   :  { %457 = vmatpush.bf16.msrb.mxu2 %v2086_v44 }
  0x54   :  { %575 = vmatpush.bf16.msra.mxu0 %v2000_v12 }
  0x55   :  { %588 = vmatpush.bf16.msra.mxu1 %v2004_v16  ;;  %614 = vmatpush.bf16.msra.mxu3 %v2006_v17 }
  0x56   :  { %600 = vmatpush.bf16.msra.mxu2 %v2008_v21 }
  0x58   :  { %576 = vmatpush.bf16.msra.mxu0 %v2012_v28 }
  0x59   :  { %589 = vmatpush.bf16.msra.mxu1 %v2016_v32  ;;  %615 = vmatpush.bf16.msra.mxu3 %v2018_v33 }
  0x5a   :  { %601 = vmatpush.bf16.msra.mxu2 %v2020_v34 }
  0x5c   :  { %577 = vmatpush.bf16.msra.mxu0 %v2024_v41 }
  0x5d   :  { %590 = vmatpush.bf16.msra.mxu1 %v2030_v45  ;;  %616 = vmatpush.bf16.msra.mxu3 %v2032_v46 }
  0x5e   :  { %602 = vmatpush.bf16.msra.mxu2 %v2026_v42 }
  0x60   :  { %578 = vmatpush.bf16.msra.mxu0 %v2036_v53 }
  0x61   :  { %591 = vmatpush.bf16.msra.mxu1 %v2042_v57  ;;  %617 = vmatpush.bf16.msra.mxu3 %v2044_v58 }
  0x62   :  { %603 = vmatpush.bf16.msra.mxu2 %v2038_v54 }
  0x64   :  { %579 = vmatpush.bf16.msra.mxu0 %v2048_v1 }
  0x65   :  { %592 = vmatpush.bf16.msra.mxu1 %v2054_v6  ;;  %618 = vmatpush.bf16.msra.mxu3 %v2056_v9 }
  0x66   :  { %604 = vmatpush.bf16.msra.mxu2 %v2050_v2 }
  0x68   :  { %580 = vmatpush.bf16.msra.mxu0 %v2060_v19 }
  0x69   :  { %593 = vmatpush.bf16.msra.mxu1 %v2066_v24  ;;  %619 = vmatpush.bf16.msra.mxu3 %v2068_v25 }
  0x6a   :  { %605 = vmatpush.bf16.msra.mxu2 %v2062_v20 }
  0x6c   :  { %581 = vmatpush.bf16.msra.mxu0 %v2072_v36 }
  0x6d   :  { %594 = vmatpush.bf16.msra.mxu1 %v2078_v38  ;;  %620 = vmatpush.bf16.msra.mxu3 %v2080_v39 }
  0x6e   :  { %606 = vmatpush.bf16.msra.mxu2 %v2074_v37 }
  0x72   :  { %607 = vmatpush.bf16.msra.mxu2 %v2086_v44 }
  0xac   :  { %v283_v60 = vpop.f32.mrf.mxu0 }
  0xad   :  { %v326_v61 = vadd.f32 %v283_v60, %v78_v56  ;;  %v296_v62 = vpop.f32.mrf.mxu1 }
  0xae   :  { %v327_v4 = vadd.f32 %v296_v62, %v79_v59 }
  0xaf   :  { %v1666_v5 = vmul.f32 -1.442695, %v326_v61 }
  0xb0   :  { %v1667_v10 = vmul.f32 -1.442695, %v327_v4 }
  0xb1   :  { %1757 = vpow2.f32 %v1666_v5 }
  0xb2   :  { %1759 = vpow2.f32 %v1667_v10 }
  0xb4   :  { %v285_v15 = vpop.f32.mrf.mxu0 }
  0xb5   :  { %v322_v13 = vpop.f32.mrf.mxu3  ;;  %v298_v18 = vpop.f32.mrf.mxu1 }
  0xb6   :  { %v329_v14 = vadd.f32 %v322_v13, %v81_v11 }
  0xb7   :  { %v1758_v23 = vpop.eup %1757 }
  0xb8   :  { %v1668_v22 = vmul.f32 -1.442695, %v329_v14  ;;  %v1760_v30 = vpop.eup %1759  ;;  %v333_v31 = vadd.f32 1.0, %v1758_v23 }
  0xb9   :  { %v352_v35 = vadd.f32 1.0, %v1760_v30 }
  0xba   :  { %v309_v29 = vpop.f32.mrf.mxu2  ;;  %1761 = vpow2.f32 %v1668_v22  ;;  %v345_v61 = vand.u32 2147483648, %v333_v31  ;;  %v343_v0 = vand.u32 2147483647, %v333_v31  ;;  %vm339_vm3 = vweird.f32 %v333_v31 }
  0xbb   :  { %1763 = vrcp.f32 %v333_v31  ;;  %v328_v50 = vadd.f32 %v309_v29, %v80_v40  ;;  %v364_v62 = vand.u32 2147483648, %v352_v35  ;;  %v362_v5 = vand.u32 2147483647, %v352_v35 }
  0xbc   :  { %1765 = vrcp.f32 %v352_v35  ;;  %vm358_vm4 = vweird.f32 %v352_v35  ;;  %v346_v15 = vor.u32 1.1754944e-38, %v345_v61  ;;  %vm344_vm6 = vcmp.eq.f32.partialorder %v343_v0, 8.507059e+37  ;;  %v400_v61 = vld [vmem:[%s399_s21] sm:$0xf]  ;;  %s845_s21 = scalar_lea.vmem %s2476_s1, %s1691_s17 }
  0xbd   :  { %v324_v43 = vpop.f32.mrf.mxu3  ;;  %v365_v22 = vor.u32 1.1754944e-38, %v364_v62  ;;  %vm363_vm8 = vcmp.eq.f32.partialorder %v362_v5, 8.507059e+37 }
  0xc0   :  { %v1762_v47 = vpop.eup %1761 }
  0xc1   :  { %v372_v51 = vadd.f32 1.0, %v1762_v47  ;;  %v1764_v55 = vpop.eup %1763 }
  0xc2   :  { %v311_v52 = vpop.f32.mrf.mxu2  ;;  %v1766_v56 = vpop.eup %1765  ;;  %v335_v59 = vmul.f32 %v1764_v55, %v333_v31  ;;  %vm340_vm1 = vweird.f32 %v1764_v55 }
  0xc3   :  { %1767 = vrcp.f32 %v372_v51  ;;  %v354_v48 = vmul.f32 %v1766_v56, %v352_v35  ;;  %vm359_vm2 = vweird.f32 %v1766_v56  ;;  %vm341_vm5 = vmor %vm339_vm3, %vm340_vm1  ;;  %v384_v35 = vand.u32 2147483648, %v372_v51 }
  0xc4   :  { %1769 = vtanh.f32 %v328_v50  ;;  %v336_v49 = vsub.f32 1.0, %v335_v59  ;;  %vm360_vm7 = vmor %vm358_vm4, %vm359_vm2  ;;  %vm378_vm10 = vweird.f32 %v372_v51  ;;  %v382_v52 = vand.u32 2147483647, %v372_v51 }
  0xc5   :  { %v355_v60 = vsub.f32 1.0, %v354_v48  ;;  %v385_v59 = vor.u32 1.1754944e-38, %v384_v35 }
  0xc6   :  { %v337_v63 = vmul.f32 %v1764_v55, %v336_v49  ;;  %vm383_vm12 = vcmp.eq.f32.partialorder %v382_v52, 8.507059e+37 }
  0xc7   :  { %v356_v4 = vmul.f32 %v1766_v56, %v355_v60 }
  0xc8   :  { %v338_v11 = vadd.f32 %v1764_v55, %v337_v63  ;;  %v411_v63 = vperm.slane %v400_v61, 0 }
  0xc9   :  { %v1768_v10 = vpop.eup %1767  ;;  %v357_v18 = vadd.f32 %v1766_v56, %v356_v4  ;;  %v412_v4 = vperm.slane %v400_v61, 1 }
  0xca   :  { %v1770_v13 = vpop.eup %1769  ;;  %v374_v14 = vmul.f32 %v1768_v10, %v372_v51  ;;  %v342_v23 = vsel %vm341_vm5, %v1764_v55, %v338_v11  ;;  %vm379_vm9 = vweird.f32 %v1768_v10  ;;  %v396_v51 = vld [vmem:[%s395_s18] sm:$0xf]  ;;  %s1693_s18 = sshll.u32 %s1692_s16, 2 }
  0xcb   :  { %v347_v27 = vsel %vm344_vm6, %v346_v15, %v342_v23  ;;  %v361_v29 = vsel %vm360_vm7, %v1766_v56, %v357_v18  ;;  %vm380_vm11 = vmor %vm378_vm10, %vm379_vm9  ;;  %v402_v62 = vperm.slane %v396_v51, 0  ;;  %v403_v0 = vperm.slane %v396_v51, 1  ;;  %s849_s24 = scalar_lea.vmem %s2476_s1, %s1693_s18  ;;  %s1711_s18 = sld [smem:[#allocation2 + $0x7]] }
  0xcc   :  { %v375_v26 = vsub.f32 1.0, %v374_v14  ;;  %v366_v30 = vsel %vm363_vm8, %v365_v22, %v361_v29  ;;  %v389_v40 = vmul.f32 %v1770_v13, %v347_v27  ;;  %v405_v18 = vperm.slane %v396_v51, 3 }
  0xcd   :  { %v388_v43 = vmul.f32 0.0, %v366_v30  ;;  %v419_v5 = vsel %vm77_vm0, %v402_v62, %v411_v63  ;;  %v414_v22 = vperm.slane %v400_v61, 3 }
  0xce   :  { %v376_v47 = vmul.f32 %v1768_v10, %v375_v26 }
  0xcf   :  { %v2163_v50 = vadd.f32 %v389_v40, %v388_v43  ;;  %v422_v27 = vsel %vm77_vm0, %v405_v18, %v414_v22 }
  0xd0   :  { %v377_v31 = vadd.f32 %v1768_v10, %v376_v47 }
  0xd1   :  { %1771 = vtanh.f32 %v2163_v50 }
  0xd2   :  { %v381_v55 = vsel %vm380_vm11, %v1768_v10, %v377_v31  ;;  %v420_v10 = vsel %vm77_vm0, %v403_v0, %v412_v4 }
  0xd3   :  { %v386_v56 = vsel %vm383_vm12, %v385_v59, %v381_v55 }
  0xd7   :  { %v1772_v48 = vpop.eup %1771 }
  0xd8   :  { %v392_v49 = vmul.f32 %v1772_v48, %v386_v56  ;;  %v404_v48 = vperm.slane %v396_v51, 2  ;;  %v413_v56 = vperm.slane %v400_v61, 2 }
  0xda   :  { %v423_v60 = vpack.c.bf16 %v392_v49, %v392_v49  ;;  %v421_v62 = vsel %vm77_vm0, %v404_v48, %v413_v56 }
  0xdc   :  { %432 = vmatmul.bf16.vlgmr.msrb.gmra.mxu0 %v423_v60  ;;  %445 = vmatmul.bf16.vlgmr.msrb.gmra.mxu1 %v423_v60 }
  0xdd   :  { %458 = vmatmul.bf16.vlgmr.msrb.gmra.mxu2 %v423_v60  ;;  %471 = vmatmul.bf16.vlgmr.msrb.gmra.mxu3 %v423_v60 }
  0xde   :  { %724 = vmatpush.bf16.msrb.mxu0 %v1993_v3  ;;  %737 = vmatpush.bf16.msrb.mxu1 %v1995_v7 }
  0xdf   :  { %750 = vmatpush.bf16.msrb.mxu2 %v2008_v21  ;;  %763 = vmatpush.bf16.msrb.mxu3 %v1997_v8 }
  0xe2   :  { %725 = vmatpush.bf16.msrb.mxu0 %v2000_v12  ;;  %738 = vmatpush.bf16.msrb.mxu1 %v2004_v16 }
  0xe3   :  { %751 = vmatpush.bf16.msrb.mxu2 %v2020_v34  ;;  %764 = vmatpush.bf16.msrb.mxu3 %v2006_v17 }
  0xe6   :  { %726 = vmatpush.bf16.msrb.mxu0 %v2012_v28  ;;  %739 = vmatpush.bf16.msrb.mxu1 %v2016_v32 }
  0xe7   :  { %752 = vmatpush.bf16.msrb.mxu2 %v2026_v42  ;;  %765 = vmatpush.bf16.msrb.mxu3 %v2018_v33 }
  0xea   :  { %727 = vmatpush.bf16.msrb.mxu0 %v2024_v41  ;;  %740 = vmatpush.bf16.msrb.mxu1 %v2030_v45 }
  0xeb   :  { %753 = vmatpush.bf16.msrb.mxu2 %v2038_v54  ;;  %766 = vmatpush.bf16.msrb.mxu3 %v2032_v46 }
  0xee   :  { %728 = vmatpush.bf16.msrb.mxu0 %v2036_v53  ;;  %741 = vmatpush.bf16.msrb.mxu1 %v2042_v57 }
  0xef   :  { %754 = vmatpush.bf16.msrb.mxu2 %v2050_v2  ;;  %767 = vmatpush.bf16.msrb.mxu3 %v2044_v58 }
  0xf2   :  { %729 = vmatpush.bf16.msrb.mxu0 %v2048_v1  ;;  %742 = vmatpush.bf16.msrb.mxu1 %v2054_v6 }
  0xf3   :  { %755 = vmatpush.bf16.msrb.mxu2 %v2062_v20  ;;  %768 = vmatpush.bf16.msrb.mxu3 %v2056_v9 }
  0xf6   :  { %730 = vmatpush.bf16.msrb.mxu0 %v2060_v19  ;;  %743 = vmatpush.bf16.msrb.mxu1 %v2066_v24 }
  0xf7   :  { %756 = vmatpush.bf16.msrb.mxu2 %v2074_v37  ;;  %769 = vmatpush.bf16.msrb.mxu3 %v2068_v25 }
  0xfa   :  { %731 = vmatpush.bf16.msrb.mxu0 %v2072_v36  ;;  %744 = vmatpush.bf16.msrb.mxu1 %v2078_v38 }
  0xfb   :  { %757 = vmatpush.bf16.msrb.mxu2 %v2086_v44  ;;  %770 = vmatpush.bf16.msrb.mxu3 %v2080_v39 }
 0x159   :  { %v433_v11 = vpop.f32.mrf.mxu0  ;;  %v446_v13 = vpop.f32.mrf.mxu1 }
 0x15a   :  { %v476_v14 = vadd.f32 %v433_v11, %v419_v5  ;;  %v477_v15 = vadd.f32 %v446_v13, %v420_v10 }
 0x15c   :  { %v1673_v23 = vmul.f32 -1.442695, %v476_v14  ;;  %v1674_v26 = vmul.f32 -1.442695, %v477_v15 }
 0x15e   :  { %1773 = vpow2.f32 %v1673_v23 }
 0x15f   :  { %1775 = vpow2.f32 %v1674_v26 }
 0x160   :  { %v459_v29 = vpop.f32.mrf.mxu2  ;;  %v472_v30 = vpop.f32.mrf.mxu3 }
 0x161   :  { %v479_v40 = vadd.f32 %v472_v30, %v422_v27  ;;  %v435_v43 = vpop.f32.mrf.mxu0  ;;  %v448_v47 = vpop.f32.mrf.mxu1  ;;  %v478_v5 = vadd.f32 %v459_v29, %v421_v62 }
 0x163   :  { %v1675_v31 = vmul.f32 -1.442695, %v479_v40 }
 0x164   :  { %v1774_v35 = vpop.eup %1773 }
 0x165   :  { %v1776_v52 = vpop.eup %1775  ;;  %v483_v55 = vadd.f32 1.0, %v1774_v35  ;;  %1777 = vpow2.f32 %v1675_v31 }
 0x166   :  { %v502_v59 = vadd.f32 1.0, %v1776_v52 }
 0x167   :  { %1779 = vrcp.f32 %v483_v55  ;;  %v495_v18 = vand.u32 2147483648, %v483_v55  ;;  %v493_v22 = vand.u32 2147483647, %v483_v55  ;;  %vm489_vm15 = vweird.f32 %v483_v55 }
 0x168   :  { %1781 = vrcp.f32 %v502_v59  ;;  %v461_v49 = vpop.f32.mrf.mxu2  ;;  %v474_v60 = vpop.f32.mrf.mxu3  ;;  %v514_v51 = vand.u32 2147483648, %v502_v59  ;;  %v512_v26 = vand.u32 2147483647, %v502_v59  ;;  %vm508_vm1 = vweird.f32 %v502_v59 }
 0x169   :  { %v496_v29 = vor.u32 1.1754944e-38, %v495_v18  ;;  %vm494_vm4 = vcmp.eq.f32.partialorder %v493_v22, 8.507059e+37 }
 0x16a   :  { %v515_v47 = vor.u32 1.1754944e-38, %v514_v51  ;;  %vm513_vm5 = vcmp.eq.f32.partialorder %v512_v26, 8.507059e+37 }
 0x16b   :  { %v1778_v63 = vpop.eup %1777 }
 0x16c   :  { %v522_v0 = vadd.f32 1.0, %v1778_v63 }
 0x16d   :  { %v1780_v4 = vpop.eup %1779 }
 0x16e   :  { %v1782_v10 = vpop.eup %1781  ;;  %v485_v11 = vmul.f32 %v1780_v4, %v483_v55  ;;  %1783 = vrcp.f32 %v522_v0  ;;  %vm490_vm13 = vweird.f32 %v1780_v4  ;;  %vm528_vm7 = vweird.f32 %v522_v0 }
 0x16f   :  { %v504_v13 = vmul.f32 %v1782_v10, %v502_v59  ;;  %1785 = vtanh.f32 %v478_v5  ;;  %vm509_vm14 = vweird.f32 %v1782_v10  ;;  %vm491_vm2 = vmor %vm489_vm15, %vm490_vm13  ;;  %v534_v5 = vand.u32 2147483648, %v522_v0 }
 0x170   :  { %v486_v14 = vsub.f32 1.0, %v485_v11  ;;  %vm510_vm3 = vmor %vm508_vm1, %vm509_vm14 }
 0x171   :  { %v505_v15 = vsub.f32 1.0, %v504_v13  ;;  %v535_v13 = vor.u32 1.1754944e-38, %v534_v5 }
 0x172   :  { %v487_v61 = vmul.f32 %v1780_v4, %v486_v14 }
 0x173   :  { %v506_v23 = vmul.f32 %v1782_v10, %v505_v15 }
 0x174   :  { %v1784_v27 = vpop.eup %1783  ;;  %v488_v30 = vadd.f32 %v1780_v4, %v487_v61 }
 0x175   :  { %v507_v40 = vadd.f32 %v1782_v10, %v506_v23  ;;  %v524_v43 = vmul.f32 %v1784_v27, %v522_v0  ;;  %v1786_v35 = vpop.eup %1785  ;;  %vm529_vm6 = vweird.f32 %v1784_v27 }
 0x176   :  { %v492_v31 = vsel %vm491_vm2, %v1780_v4, %v488_v30  ;;  %v532_v4 = vand.u32 2147483647, %v522_v0  ;;  %vm530_vm8 = vmor %vm528_vm7, %vm529_vm6  ;;  %v550_v0 = vld [vmem:[%s549_s29] sm:$0xf]  ;;  %s995_s29 = scalar_lea.vmem %s2476_s1, %s1698_s27 }
 0x177   :  { %v497_v52 = vsel %vm494_vm4, %v496_v29, %v492_v31  ;;  %v511_v48 = vsel %vm510_vm3, %v1782_v10, %v507_v40  ;;  %v525_v56 = vsub.f32 1.0, %v524_v43  ;;  %v561_v61 = vperm.slane %v550_v0, 0 }
 0x178   :  { %v516_v49 = vsel %vm513_vm5, %v515_v47, %v511_v48  ;;  %v539_v60 = vmul.f32 %v1786_v35, %v497_v52  ;;  %vm533_vm9 = vcmp.eq.f32.partialorder %v532_v4, 8.507059e+37  ;;  %v562_v23 = vperm.slane %v550_v0, 1 }
 0x179   :  { %v538_v62 = vmul.f32 %v516_v49, %v2163_v50  ;;  %v526_v63 = vmul.f32 %v1784_v27, %v525_v56  ;;  %v546_v50 = vld [vmem:[%s545_s28] sm:$0xf]  ;;  %v564_v31 = vperm.slane %v550_v0, 3  ;;  %s1700_s28 = sshll.u32 %s1699_s26, 2 }
 0x17a   :  { %v552_v51 = vperm.slane %v546_v50, 0  ;;  %v553_v22 = vperm.slane %v546_v50, 1  ;;  %v555_v47 = vperm.slane %v546_v50, 3  ;;  %s999_s7 = scalar_lea.vmem %s2476_s1, %s1700_s28 }
 0x17b   :  { %v2209_v55 = vadd.f32 %v539_v60, %v538_v62  ;;  %v527_v59 = vadd.f32 %v1784_v27, %v526_v63 }
 0x17c   :  { %v569_v26 = vsel %vm77_vm0, %v552_v51, %v561_v61  ;;  %v572_v48 = vsel %vm77_vm0, %v555_v47, %v564_v31 }
 0x17d   :  { %1787 = vtanh.f32 %v2209_v55  ;;  %v531_v11 = vsel %vm530_vm8, %v1784_v27, %v527_v59  ;;  %v570_v27 = vsel %vm77_vm0, %v553_v22, %v562_v23 }
 0x17e   :  { %v536_v14 = vsel %vm533_vm9, %v535_v13, %v531_v11 }
 0x183   :  { %v1788_v10 = vpop.eup %1787 }
 0x184   :  { %v542_v15 = vmul.f32 %v1788_v10, %v536_v14  ;;  %v554_v10 = vperm.slane %v546_v50, 2  ;;  %v563_v14 = vperm.slane %v550_v0, 2 }
 0x186   :  { %v573_v18 = vpack.c.bf16 %v542_v15, %v542_v15  ;;  %v571_v51 = vsel %vm77_vm0, %v554_v10, %v563_v14 }
 0x188   :  { %582 = vmatmul.bf16.vlgmr.msra.gmra.mxu0 %v573_v18  ;;  %595 = vmatmul.bf16.vlgmr.msra.gmra.mxu1 %v573_v18 }
 0x189   :  { %608 = vmatmul.bf16.vlgmr.msra.gmra.mxu2 %v573_v18  ;;  %621 = vmatmul.bf16.vlgmr.msra.gmra.mxu3 %v573_v18 }
 0x18a   :  { %874 = vmatpush.bf16.msra.mxu0 %v1993_v3  ;;  %887 = vmatpush.bf16.msra.mxu1 %v1995_v7 }
 0x18b   :  { %900 = vmatpush.bf16.msra.mxu2 %v2008_v21  ;;  %913 = vmatpush.bf16.msra.mxu3 %v1997_v8 }
 0x18e   :  { %875 = vmatpush.bf16.msra.mxu0 %v2000_v12  ;;  %888 = vmatpush.bf16.msra.mxu1 %v2004_v16 }
 0x18f   :  { %901 = vmatpush.bf16.msra.mxu2 %v2020_v34  ;;  %914 = vmatpush.bf16.msra.mxu3 %v2006_v17 }
 0x192   :  { %876 = vmatpush.bf16.msra.mxu0 %v2012_v28  ;;  %889 = vmatpush.bf16.msra.mxu1 %v2016_v32 }
 0x193   :  { %902 = vmatpush.bf16.msra.mxu2 %v2026_v42  ;;  %915 = vmatpush.bf16.msra.mxu3 %v2018_v33 }
 0x196   :  { %877 = vmatpush.bf16.msra.mxu0 %v2024_v41  ;;  %890 = vmatpush.bf16.msra.mxu1 %v2030_v45 }
 0x197   :  { %903 = vmatpush.bf16.msra.mxu2 %v2038_v54  ;;  %916 = vmatpush.bf16.msra.mxu3 %v2032_v46 }
 0x19a   :  { %878 = vmatpush.bf16.msra.mxu0 %v2036_v53  ;;  %891 = vmatpush.bf16.msra.mxu1 %v2042_v57 }
 0x19b   :  { %904 = vmatpush.bf16.msra.mxu2 %v2050_v2  ;;  %917 = vmatpush.bf16.msra.mxu3 %v2044_v58 }
 0x19e   :  { %879 = vmatpush.bf16.msra.mxu0 %v2048_v1  ;;  %892 = vmatpush.bf16.msra.mxu1 %v2054_v6 }
 0x19f   :  { %905 = vmatpush.bf16.msra.mxu2 %v2062_v20  ;;  %918 = vmatpush.bf16.msra.mxu3 %v2056_v9 }
 0x1a2   :  { %880 = vmatpush.bf16.msra.mxu0 %v2060_v19  ;;  %893 = vmatpush.bf16.msra.mxu1 %v2066_v24 }
 0x1a3   :  { %906 = vmatpush.bf16.msra.mxu2 %v2074_v37  ;;  %919 = vmatpush.bf16.msra.mxu3 %v2068_v25 }
 0x1a6   :  { %881 = vmatpush.bf16.msra.mxu0 %v2072_v36  ;;  %894 = vmatpush.bf16.msra.mxu1 %v2078_v38 }
 0x1a7   :  { %907 = vmatpush.bf16.msra.mxu2 %v2086_v44  ;;  %920 = vmatpush.bf16.msra.mxu3 %v2080_v39 }
 0x205   :  { %v583_v30 = vpop.f32.mrf.mxu0  ;;  %v596_v29 = vpop.f32.mrf.mxu1 }
 0x206   :  { %v626_v40 = vadd.f32 %v583_v30, %v569_v26  ;;  %v627_v43 = vadd.f32 %v596_v29, %v570_v27 }
 0x208   :  { %v1680_v35 = vmul.f32 -1.442695, %v626_v40  ;;  %v1681_v52 = vmul.f32 -1.442695, %v627_v43 }
 0x20a   :  { %1789 = vpow2.f32 %v1680_v35 }
 0x20b   :  { %1791 = vpow2.f32 %v1681_v52 }
 0x20c   :  { %v609_v56 = vpop.f32.mrf.mxu2  ;;  %v622_v49 = vpop.f32.mrf.mxu3 }
 0x20d   :  { %v629_v60 = vadd.f32 %v622_v49, %v572_v48  ;;  %v585_v62 = vpop.f32.mrf.mxu0  ;;  %v598_v63 = vpop.f32.mrf.mxu1  ;;  %v628_v26 = vadd.f32 %v609_v56, %v571_v51 }
 0x20f   :  { %v1682_v59 = vmul.f32 -1.442695, %v629_v60 }
 0x210   :  { %v1790_v5 = vpop.eup %1789 }
 0x211   :  { %v1792_v4 = vpop.eup %1791  ;;  %v633_v11 = vadd.f32 1.0, %v1790_v5  ;;  %1793 = vpow2.f32 %v1682_v59 }
 0x212   :  { %v652_v13 = vadd.f32 1.0, %v1792_v4 }
 0x213   :  { %1795 = vrcp.f32 %v633_v11  ;;  %v645_v47 = vand.u32 2147483648, %v633_v11  ;;  %v643_v31 = vand.u32 2147483647, %v633_v11  ;;  %vm639_vm12 = vweird.f32 %v633_v11 }
 0x214   :  { %1797 = vrcp.f32 %v652_v13  ;;  %v611_v15 = vpop.f32.mrf.mxu2  ;;  %v624_v18 = vpop.f32.mrf.mxu3  ;;  %v664_v50 = vand.u32 2147483648, %v652_v13  ;;  %v662_v52 = vand.u32 2147483647, %v652_v13  ;;  %vm658_vm13 = vweird.f32 %v652_v13 }
 0x215   :  { %v646_v56 = vor.u32 1.1754944e-38, %v645_v47  ;;  %vm644_vm1 = vcmp.eq.f32.partialorder %v643_v31, 8.507059e+37 }
 0x216   :  { %v665_v63 = vor.u32 1.1754944e-38, %v664_v50  ;;  %vm663_vm2 = vcmp.eq.f32.partialorder %v662_v52, 8.507059e+37 }
 0x217   :  { %v1794_v61 = vpop.eup %1793 }
 0x218   :  { %v672_v22 = vadd.f32 1.0, %v1794_v61 }
 0x219   :  { %v1796_v23 = vpop.eup %1795 }
 0x21a   :  { %v1798_v27 = vpop.eup %1797  ;;  %v635_v30 = vmul.f32 %v1796_v23, %v633_v11  ;;  %1799 = vrcp.f32 %v672_v22  ;;  %vm640_vm10 = vweird.f32 %v1796_v23  ;;  %vm678_vm4 = vweird.f32 %v672_v22 }
 0x21b   :  { %v654_v29 = vmul.f32 %v1798_v27, %v652_v13  ;;  %1801 = vtanh.f32 %v628_v26  ;;  %vm659_vm11 = vweird.f32 %v1798_v27  ;;  %vm641_vm14 = vmor %vm639_vm12, %vm640_vm10  ;;  %v684_v26 = vand.u32 2147483648, %v672_v22 }
 0x21c   :  { %v636_v40 = vsub.f32 1.0, %v635_v30  ;;  %vm660_vm15 = vmor %vm658_vm13, %vm659_vm11 }
 0x21d   :  { %v655_v43 = vsub.f32 1.0, %v654_v29  ;;  %v685_v29 = vor.u32 1.1754944e-38, %v684_v26 }
 0x21e   :  { %v637_v0 = vmul.f32 %v1796_v23, %v636_v40 }
 0x21f   :  { %v656_v35 = vmul.f32 %v1798_v27, %v655_v43 }
 0x220   :  { %v1800_v48 = vpop.eup %1799  ;;  %v638_v49 = vadd.f32 %v1796_v23, %v637_v0 }
 0x221   :  { %v657_v60 = vadd.f32 %v1798_v27, %v656_v35  ;;  %v674_v62 = vmul.f32 %v1800_v48, %v672_v22  ;;  %v1802_v5 = vpop.eup %1801  ;;  %vm679_vm3 = vweird.f32 %v1800_v48 }
 0x222   :  { %v642_v59 = vsel %vm641_vm14, %v1796_v23, %v638_v49  ;;  %v682_v23 = vand.u32 2147483647, %v672_v22  ;;  %vm680_vm5 = vmor %vm678_vm4, %vm679_vm3  ;;  %v700_v22 = vld [vmem:[%s699_s14] sm:$0xf]  ;;  %s1145_s14 = scalar_lea.vmem %s2476_s1, %s1705_s10  ;;  %s1492_s10 = sshll.u32 %s2480_s5, 4  ;;  %s1493_s10 = int_to_ptr.hbm [resolvable:$true] %s1492_s10 }
 0x223   :  { %v647_v4 = vsel %vm644_vm1, %v646_v56, %v642_v59  ;;  %v661_v10 = vsel %vm660_vm15, %v1798_v27, %v657_v60  ;;  %v675_v14 = vsub.f32 1.0, %v674_v62  ;;  %v711_v0 = vperm.slane %v700_v22, 0 }
 0x224   :  { %v666_v15 = vsel %vm663_vm2, %v665_v63, %v661_v10  ;;  %v689_v18 = vmul.f32 %v1802_v5, %v647_v4  ;;  %vm683_vm6 = vcmp.eq.f32.partialorder %v682_v23, 8.507059e+37  ;;  %v712_v35 = vperm.slane %v700_v22, 1 }
 0x225   :  { %v688_v51 = vmul.f32 %v666_v15, %v2209_v55  ;;  %v676_v61 = vmul.f32 %v1800_v48, %v675_v14  ;;  %v696_v55 = vld [vmem:[%s695_s11] sm:$0xf]  ;;  %v714_v59 = vperm.slane %v700_v22, 3  ;;  %s1707_s11 = sshll.u32 %s1706_s9, 2 }
 0x226   :  { %v702_v50 = vperm.slane %v696_v55, 0  ;;  %v703_v31 = vperm.slane %v696_v55, 1  ;;  %v705_v63 = vperm.slane %v696_v55, 3  ;;  %s1149_s17 = scalar_lea.vmem %s2476_s1, %s1707_s11 }
 0x227   :  { %v2255_v11 = vadd.f32 %v689_v18, %v688_v51  ;;  %v677_v13 = vadd.f32 %v1800_v48, %v676_v61 }
 0x228   :  { %v719_v52 = vsel %vm77_vm0, %v702_v50, %v711_v0  ;;  %v722_v10 = vsel %vm77_vm0, %v705_v63, %v714_v59 }
 0x229   :  { %1803 = vtanh.f32 %v2255_v11  ;;  %v681_v30 = vsel %vm680_vm5, %v1800_v48, %v677_v13  ;;  %v720_v48 = vsel %vm77_vm0, %v703_v31, %v712_v35 }
 0x22a   :  { %v686_v40 = vsel %vm683_vm6, %v685_v29, %v681_v30 }
 0x22f   :  { %v1804_v27 = vpop.eup %1803 }
 0x230   :  { %v692_v43 = vmul.f32 %v1804_v27, %v686_v40  ;;  %v704_v27 = vperm.slane %v696_v55, 2  ;;  %v713_v40 = vperm.slane %v700_v22, 2 }
 0x232   :  { %v723_v47 = vpack.c.bf16 %v692_v43, %v692_v43  ;;  %v721_v50 = vsel %vm77_vm0, %v704_v27, %v713_v40 }
 0x234   :  { %732 = vmatmul.bf16.vlgmr.msrb.gmra.mxu0 %v723_v47  ;;  %745 = vmatmul.bf16.vlgmr.msrb.gmra.mxu1 %v723_v47 }
 0x235   :  { %758 = vmatmul.bf16.vlgmr.msrb.gmra.mxu2 %v723_v47  ;;  %771 = vmatmul.bf16.vlgmr.msrb.gmra.mxu3 %v723_v47 }
 0x236   :  { %1024 = vmatpush.bf16.msrb.mxu0 %v1993_v3  ;;  %1037 = vmatpush.bf16.msrb.mxu1 %v1995_v7 }
 0x237   :  { %1050 = vmatpush.bf16.msrb.mxu2 %v2008_v21  ;;  %1063 = vmatpush.bf16.msrb.mxu3 %v1997_v8 }
 0x23a   :  { %1025 = vmatpush.bf16.msrb.mxu0 %v2000_v12  ;;  %1038 = vmatpush.bf16.msrb.mxu1 %v2004_v16 }
 0x23b   :  { %1051 = vmatpush.bf16.msrb.mxu2 %v2020_v34  ;;  %1064 = vmatpush.bf16.msrb.mxu3 %v2006_v17 }
 0x23e   :  { %1026 = vmatpush.bf16.msrb.mxu0 %v2012_v28  ;;  %1039 = vmatpush.bf16.msrb.mxu1 %v2016_v32 }
 0x23f   :  { %1052 = vmatpush.bf16.msrb.mxu2 %v2026_v42  ;;  %1065 = vmatpush.bf16.msrb.mxu3 %v2018_v33 }
 0x242   :  { %1027 = vmatpush.bf16.msrb.mxu0 %v2024_v41  ;;  %1040 = vmatpush.bf16.msrb.mxu1 %v2030_v45 }
 0x243   :  { %1053 = vmatpush.bf16.msrb.mxu2 %v2038_v54  ;;  %1066 = vmatpush.bf16.msrb.mxu3 %v2032_v46 }
 0x246   :  { %1028 = vmatpush.bf16.msrb.mxu0 %v2036_v53  ;;  %1041 = vmatpush.bf16.msrb.mxu1 %v2042_v57 }
 0x247   :  { %1054 = vmatpush.bf16.msrb.mxu2 %v2050_v2  ;;  %1067 = vmatpush.bf16.msrb.mxu3 %v2044_v58 }
 0x24a   :  { %1029 = vmatpush.bf16.msrb.mxu0 %v2048_v1  ;;  %1042 = vmatpush.bf16.msrb.mxu1 %v2054_v6 }
 0x24b   :  { %1055 = vmatpush.bf16.msrb.mxu2 %v2062_v20  ;;  %1068 = vmatpush.bf16.msrb.mxu3 %v2056_v9 }
 0x24e   :  { %1030 = vmatpush.bf16.msrb.mxu0 %v2060_v19  ;;  %1043 = vmatpush.bf16.msrb.mxu1 %v2066_v24 }
 0x24f   :  { %1056 = vmatpush.bf16.msrb.mxu2 %v2074_v37  ;;  %1069 = vmatpush.bf16.msrb.mxu3 %v2068_v25 }
 0x252   :  { %1031 = vmatpush.bf16.msrb.mxu0 %v2072_v36  ;;  %1044 = vmatpush.bf16.msrb.mxu1 %v2078_v38 }
 0x253   :  { %1057 = vmatpush.bf16.msrb.mxu2 %v2086_v44  ;;  %1070 = vmatpush.bf16.msrb.mxu3 %v2080_v39 }
 0x2b1   :  { %v733_v49 = vpop.f32.mrf.mxu0  ;;  %v746_v56 = vpop.f32.mrf.mxu1 }
 0x2b2   :  { %v776_v60 = vadd.f32 %v733_v49, %v719_v52  ;;  %v777_v62 = vadd.f32 %v746_v56, %v720_v48 }
 0x2b4   :  { %v1687_v5 = vmul.f32 -1.442695, %v776_v60  ;;  %v1688_v4 = vmul.f32 -1.442695, %v777_v62 }
 0x2b6   :  { %1805 = vpow2.f32 %v1687_v5 }
 0x2b7   :  { %1807 = vpow2.f32 %v1688_v4 }
 0x2b8   :  { %v759_v14 = vpop.f32.mrf.mxu2  ;;  %v772_v15 = vpop.f32.mrf.mxu3 }
 0x2b9   :  { %v779_v18 = vadd.f32 %v772_v15, %v722_v10  ;;  %v735_v51 = vpop.f32.mrf.mxu0  ;;  %v748_v61 = vpop.f32.mrf.mxu1  ;;  %v778_v52 = vadd.f32 %v759_v14, %v721_v50 }
 0x2bb   :  { %v1689_v13 = vmul.f32 -1.442695, %v779_v18 }
 0x2bc   :  { %v1806_v26 = vpop.eup %1805 }
 0x2bd   :  { %v1808_v23 = vpop.eup %1807  ;;  %v783_v30 = vadd.f32 1.0, %v1806_v26  ;;  %1809 = vpow2.f32 %v1689_v13 }
 0x2be   :  { %v802_v29 = vadd.f32 1.0, %v1808_v23 }
 0x2bf   :  { %1811 = vrcp.f32 %v783_v30  ;;  %v795_v63 = vand.u32 2147483648, %v783_v30  ;;  %v793_v59 = vand.u32 2147483647, %v783_v30  ;;  %vm789_vm9 = vweird.f32 %v783_v30 }
 0x2c0   :  { %1813 = vrcp.f32 %v802_v29  ;;  %v761_v43 = vpop.f32.mrf.mxu2  ;;  %v774_v47 = vpop.f32.mrf.mxu3  ;;  %v814_v55 = vand.u32 2147483648, %v802_v29  ;;  %v812_v4 = vand.u32 2147483647, %v802_v29  ;;  %vm808_vm10 = vweird.f32 %v802_v29 }
 0x2c1   :  { %v796_v14 = vor.u32 1.1754944e-38, %v795_v63  ;;  %vm794_vm13 = vcmp.eq.f32.partialorder %v793_v59, 8.507059e+37 }
 0x2c2   :  { %v815_v61 = vor.u32 1.1754944e-38, %v814_v55  ;;  %vm813_vm14 = vcmp.eq.f32.partialorder %v812_v4, 8.507059e+37 }
 0x2c3   :  { %v1810_v0 = vpop.eup %1809 }
 0x2c4   :  { %v822_v31 = vadd.f32 1.0, %v1810_v0 }
 0x2c5   :  { %v1812_v35 = vpop.eup %1811 }
 0x2c6   :  { %v1814_v48 = vpop.eup %1813  ;;  %v785_v49 = vmul.f32 %v1812_v35, %v783_v30  ;;  %1815 = vrcp.f32 %v822_v31  ;;  %vm790_vm7 = vweird.f32 %v1812_v35  ;;  %vm828_vm1 = vweird.f32 %v822_v31 }
 0x2c7   :  { %v804_v56 = vmul.f32 %v1814_v48, %v802_v29  ;;  %1817 = vtanh.f32 %v778_v52  ;;  %vm809_vm8 = vweird.f32 %v1814_v48  ;;  %vm791_vm11 = vmor %vm789_vm9, %vm790_vm7  ;;  %v834_v52 = vand.u32 2147483648, %v822_v31 }
 0x2c8   :  { %v786_v60 = vsub.f32 1.0, %v785_v49  ;;  %vm810_vm12 = vmor %vm808_vm10, %vm809_vm8 }
 0x2c9   :  { %v805_v62 = vsub.f32 1.0, %v804_v56  ;;  %v835_v56 = vor.u32 1.1754944e-38, %v834_v52 }
 0x2ca   :  { %v787_v22 = vmul.f32 %v1812_v35, %v786_v60 }
 0x2cb   :  { %v806_v5 = vmul.f32 %v1814_v48, %v805_v62 }
 0x2cc   :  { %v1816_v10 = vpop.eup %1815  ;;  %v788_v15 = vadd.f32 %v1812_v35, %v787_v22 }
 0x2cd   :  { %v807_v18 = vadd.f32 %v1814_v48, %v806_v5  ;;  %v824_v51 = vmul.f32 %v1816_v10, %v822_v31  ;;  %v1818_v26 = vpop.eup %1817  ;;  %vm829_vm15 = vweird.f32 %v1816_v10 }
 0x2ce   :  { %v792_v13 = vsel %vm791_vm11, %v1812_v35, %v788_v15  ;;  %v832_v35 = vand.u32 2147483647, %v822_v31  ;;  %vm830_vm2 = vmor %vm828_vm1, %vm829_vm15  ;;  %v850_v31 = vld [vmem:[%s849_s24] sm:$0xf]  ;;  %s1712_s24 = sshll.u32 %s1711_s18, 2 }
 0x2cf   :  { %v797_v23 = vsel %vm794_vm13, %v796_v14, %v792_v13  ;;  %v811_v27 = vsel %vm810_vm12, %v1814_v48, %v807_v18  ;;  %v825_v40 = vsub.f32 1.0, %v824_v51  ;;  %v861_v22 = vperm.slane %v850_v31, 0  ;;  %s1295_s30 = scalar_lea.vmem %s2476_s1, %s1712_s24 }
 0x2d0   :  { %v816_v43 = vsel %vm813_vm14, %v815_v61, %v811_v27  ;;  %v839_v47 = vmul.f32 %v1818_v26, %v797_v23  ;;  %vm833_vm3 = vcmp.eq.f32.partialorder %v832_v35, 8.507059e+37  ;;  %v862_v5 = vperm.slane %v850_v31, 1 }
 0x2d1   :  { %v838_v50 = vmul.f32 %v816_v43, %v2255_v11  ;;  %v826_v0 = vmul.f32 %v1816_v10, %v825_v40  ;;  %v846_v11 = vld [vmem:[%s845_s21] sm:$0xf]  ;;  %v864_v13 = vperm.slane %v850_v31, 3 }
 0x2d2   :  { %v852_v55 = vperm.slane %v846_v11, 0  ;;  %v853_v59 = vperm.slane %v846_v11, 1  ;;  %v855_v61 = vperm.slane %v846_v11, 3 }
 0x2d3   :  { %v2301_v30 = vadd.f32 %v839_v47, %v838_v50  ;;  %v827_v29 = vadd.f32 %v1816_v10, %v826_v0 }
 0x2d4   :  { %v869_v4 = vsel %vm77_vm0, %v852_v55, %v861_v22  ;;  %v872_v27 = vsel %vm77_vm0, %v855_v61, %v864_v13 }
 0x2d5   :  { %1819 = vtanh.f32 %v2301_v30  ;;  %v831_v49 = vsel %vm830_vm2, %v1816_v10, %v827_v29  ;;  %v870_v10 = vsel %vm77_vm0, %v853_v59, %v862_v5 }
 0x2d6   :  { %v836_v60 = vsel %vm833_vm3, %v835_v56, %v831_v49 }
 0x2db   :  { %v1820_v48 = vpop.eup %1819 }
 0x2dc   :  { %v842_v62 = vmul.f32 %v1820_v48, %v836_v60  ;;  %v854_v48 = vperm.slane %v846_v11, 2  ;;  %v863_v60 = vperm.slane %v850_v31, 2 }
 0x2de   :  { %v873_v63 = vpack.c.bf16 %v842_v62, %v842_v62  ;;  %v871_v55 = vsel %vm77_vm0, %v854_v48, %v863_v60 }
 0x2e0   :  { %882 = vmatmul.bf16.vlgmr.msra.gmra.mxu0 %v873_v63  ;;  %895 = vmatmul.bf16.vlgmr.msra.gmra.mxu1 %v873_v63 }
 0x2e1   :  { %908 = vmatmul.bf16.vlgmr.msra.gmra.mxu2 %v873_v63  ;;  %921 = vmatmul.bf16.vlgmr.msra.gmra.mxu3 %v873_v63 }
 0x2e2   :  { %1174 = vmatpush.bf16.msra.mxu0 %v1993_v3  ;;  %1187 = vmatpush.bf16.msra.mxu1 %v1995_v7 }
 0x2e3   :  { %1200 = vmatpush.bf16.msra.mxu2 %v2008_v21  ;;  %1213 = vmatpush.bf16.msra.mxu3 %v1997_v8 }
 0x2e6   :  { %1175 = vmatpush.bf16.msra.mxu0 %v2000_v12  ;;  %1188 = vmatpush.bf16.msra.mxu1 %v2004_v16 }
 0x2e7   :  { %1201 = vmatpush.bf16.msra.mxu2 %v2020_v34  ;;  %1214 = vmatpush.bf16.msra.mxu3 %v2006_v17 }
 0x2ea   :  { %1176 = vmatpush.bf16.msra.mxu0 %v2012_v28  ;;  %1189 = vmatpush.bf16.msra.mxu1 %v2016_v32 }
 0x2eb   :  { %1202 = vmatpush.bf16.msra.mxu2 %v2026_v42  ;;  %1215 = vmatpush.bf16.msra.mxu3 %v2018_v33 }
 0x2ee   :  { %1177 = vmatpush.bf16.msra.mxu0 %v2024_v41  ;;  %1190 = vmatpush.bf16.msra.mxu1 %v2030_v45 }
 0x2ef   :  { %1203 = vmatpush.bf16.msra.mxu2 %v2038_v54  ;;  %1216 = vmatpush.bf16.msra.mxu3 %v2032_v46 }
 0x2f2   :  { %1178 = vmatpush.bf16.msra.mxu0 %v2036_v53  ;;  %1191 = vmatpush.bf16.msra.mxu1 %v2042_v57 }
 0x2f3   :  { %1204 = vmatpush.bf16.msra.mxu2 %v2050_v2  ;;  %1217 = vmatpush.bf16.msra.mxu3 %v2044_v58 }
 0x2f6   :  { %1179 = vmatpush.bf16.msra.mxu0 %v2048_v1  ;;  %1192 = vmatpush.bf16.msra.mxu1 %v2054_v6 }
 0x2f7   :  { %1205 = vmatpush.bf16.msra.mxu2 %v2062_v20  ;;  %1218 = vmatpush.bf16.msra.mxu3 %v2056_v9 }
 0x2fa   :  { %1180 = vmatpush.bf16.msra.mxu0 %v2060_v19  ;;  %1193 = vmatpush.bf16.msra.mxu1 %v2066_v24 }
 0x2fb   :  { %1206 = vmatpush.bf16.msra.mxu2 %v2074_v37  ;;  %1219 = vmatpush.bf16.msra.mxu3 %v2068_v25 }
 0x2fe   :  { %1181 = vmatpush.bf16.msra.mxu0 %v2072_v36  ;;  %1194 = vmatpush.bf16.msra.mxu1 %v2078_v38 }
 0x2ff   :  { %1207 = vmatpush.bf16.msra.mxu2 %v2086_v44  ;;  %1220 = vmatpush.bf16.msra.mxu3 %v2080_v39 }
 0x35d   :  { %v883_v15 = vpop.f32.mrf.mxu0  ;;  %v896_v14 = vpop.f32.mrf.mxu1 }
 0x35e   :  { %v926_v18 = vadd.f32 %v883_v15, %v869_v4  ;;  %v927_v51 = vadd.f32 %v896_v14, %v870_v10 }
 0x360   :  { %v1694_v26 = vmul.f32 -1.442695, %v926_v18  ;;  %v1695_v23 = vmul.f32 -1.442695, %v927_v51 }
 0x362   :  { %1821 = vpow2.f32 %v1694_v26 }
 0x363   :  { %1823 = vpow2.f32 %v1695_v23 }
 0x364   :  { %v909_v40 = vpop.f32.mrf.mxu2  ;;  %v922_v43 = vpop.f32.mrf.mxu3 }
 0x365   :  { %v929_v47 = vadd.f32 %v922_v43, %v872_v27  ;;  %v885_v50 = vpop.f32.mrf.mxu0  ;;  %v898_v0 = vpop.f32.mrf.mxu1  ;;  %v928_v4 = vadd.f32 %v909_v40, %v871_v55 }
 0x367   :  { %v1696_v29 = vmul.f32 -1.442695, %v929_v47 }
 0x368   :  { %v1822_v52 = vpop.eup %1821 }
 0x369   :  { %v1824_v35 = vpop.eup %1823  ;;  %v933_v49 = vadd.f32 1.0, %v1822_v52  ;;  %1825 = vpow2.f32 %v1696_v29 }
 0x36a   :  { %v952_v56 = vadd.f32 1.0, %v1824_v35 }
 0x36b   :  { %1827 = vrcp.f32 %v933_v49  ;;  %v945_v61 = vand.u32 2147483648, %v933_v49  ;;  %v943_v13 = vand.u32 2147483647, %v933_v49  ;;  %vm939_vm6 = vweird.f32 %v933_v49 }
 0x36c   :  { %1829 = vrcp.f32 %v952_v56  ;;  %v911_v62 = vpop.f32.mrf.mxu2  ;;  %v924_v63 = vpop.f32.mrf.mxu3  ;;  %v964_v11 = vand.u32 2147483648, %v952_v56  ;;  %v962_v23 = vand.u32 2147483647, %v952_v56  ;;  %vm958_vm7 = vweird.f32 %v952_v56 }
 0x36d   :  { %v946_v40 = vor.u32 1.1754944e-38, %v945_v61  ;;  %vm944_vm10 = vcmp.eq.f32.partialorder %v943_v13, 8.507059e+37 }
 0x36e   :  { %v965_v0 = vor.u32 1.1754944e-38, %v964_v11  ;;  %vm963_vm11 = vcmp.eq.f32.partialorder %v962_v23, 8.507059e+37 }
 0x36f   :  { %v1826_v22 = vpop.eup %1825 }
 0x370   :  { %v972_v59 = vadd.f32 1.0, %v1826_v22 }
 0x371   :  { %v1828_v5 = vpop.eup %1827 }
 0x372   :  { %v1830_v10 = vpop.eup %1829  ;;  %v935_v15 = vmul.f32 %v1828_v5, %v933_v49  ;;  %1831 = vrcp.f32 %v972_v59  ;;  %vm940_vm4 = vweird.f32 %v1828_v5  ;;  %vm978_vm13 = vweird.f32 %v972_v59 }
 0x373   :  { %v954_v14 = vmul.f32 %v1830_v10, %v952_v56  ;;  %1833 = vtanh.f32 %v928_v4  ;;  %vm959_vm5 = vweird.f32 %v1830_v10  ;;  %vm941_vm8 = vmor %vm939_vm6, %vm940_vm4  ;;  %v984_v4 = vand.u32 2147483648, %v972_v59 }
 0x374   :  { %v936_v18 = vsub.f32 1.0, %v935_v15  ;;  %vm960_vm9 = vmor %vm958_vm7, %vm959_vm5 }
 0x375   :  { %v955_v51 = vsub.f32 1.0, %v954_v14  ;;  %v985_v14 = vor.u32 1.1754944e-38, %v984_v4 }
 0x376   :  { %v937_v31 = vmul.f32 %v1828_v5, %v936_v18 }
 0x377   :  { %v956_v26 = vmul.f32 %v1830_v10, %v955_v51 }
 0x378   :  { %v1832_v27 = vpop.eup %1831  ;;  %v938_v43 = vadd.f32 %v1828_v5, %v937_v31 }
 0x379   :  { %v957_v47 = vadd.f32 %v1830_v10, %v956_v26  ;;  %v974_v50 = vmul.f32 %v1832_v27, %v972_v59  ;;  %v1834_v52 = vpop.eup %1833  ;;  %vm979_vm12 = vweird.f32 %v1832_v27 }
 0x37a   :  { %v942_v29 = vsel %vm941_vm8, %v1828_v5, %v938_v43  ;;  %v982_v5 = vand.u32 2147483647, %v972_v59  ;;  %vm980_vm14 = vmor %vm978_vm13, %vm979_vm12 }
 0x37b   :  { %v947_v35 = vsel %vm944_vm10, %v946_v40, %v942_v29  ;;  %v961_v48 = vsel %vm960_vm9, %v1830_v10, %v957_v47  ;;  %v975_v60 = vsub.f32 1.0, %v974_v50 }
 0x37c   :  { %v966_v62 = vsel %vm963_vm11, %v965_v0, %v961_v48  ;;  %v989_v63 = vmul.f32 %v1834_v52, %v947_v35  ;;  %vm983_vm15 = vcmp.eq.f32.partialorder %v982_v5, 8.507059e+37 }
 0x37d   :  { %v988_v55 = vmul.f32 %v966_v62, %v2301_v30  ;;  %v976_v22 = vmul.f32 %v1832_v27, %v975_v60 }
 0x37f   :  { %v2347_v49 = vadd.f32 %v989_v63, %v988_v55  ;;  %v977_v56 = vadd.f32 %v1832_v27, %v976_v22 }
 0x381   :  { %1835 = vtanh.f32 %v2347_v49  ;;  %v981_v15 = vsel %vm980_vm14, %v1832_v27, %v977_v56 }
 0x382   :  { %v986_v18 = vsel %vm983_vm15, %v985_v14, %v981_v15 }
 0x387   :  { %v1836_v10 = vpop.eup %1835 }
 0x388   :  { %v992_v51 = vmul.f32 %v1836_v10, %v986_v18 }
 0x38a   :  { %v1023_v61 = vpack.c.bf16 %v992_v51, %v992_v51 }
 0x38c   :  { %1032 = vmatmul.bf16.vlgmr.msrb.gmra.mxu0 %v1023_v61  ;;  %1045 = vmatmul.bf16.vlgmr.msrb.gmra.mxu1 %v1023_v61 }
 0x38d   :  { %1058 = vmatmul.bf16.vlgmr.msrb.gmra.mxu2 %v1023_v61  ;;  %1071 = vmatmul.bf16.vlgmr.msrb.gmra.mxu3 %v1023_v61 }
 0x38e   :  { %1324 = vmatpush.bf16.msrb.mxu0 %v1993_v3  ;;  %1337 = vmatpush.bf16.msrb.mxu1 %v1995_v7  ;;  %v996_v3 = vld [vmem:[%s995_s29] sm:$0xf] }
 0x38f   :  { %1350 = vmatpush.bf16.msrb.mxu2 %v2008_v21  ;;  %1363 = vmatpush.bf16.msrb.mxu3 %v1997_v8  ;;  %v1000_v7 = vld [vmem:[%s999_s7] sm:$0xf]  ;;  %v1002_v8 = vperm.slane %v996_v3, 0  ;;  %s1490_s7 = sshll.u32 %s1956_s6, 4  ;;  %s1491_s7 = int_to_ptr.vmem [resolvable:$true] %s1490_s7 }
 0x392   :  { %1325 = vmatpush.bf16.msrb.mxu0 %v2000_v12  ;;  %1338 = vmatpush.bf16.msrb.mxu1 %v2004_v16  ;;  %v1011_v12 = vperm.slane %v1000_v7, 0  ;;  %v1003_v16 = vperm.slane %v996_v3, 1 }
 0x393   :  { %1351 = vmatpush.bf16.msrb.mxu2 %v2020_v34  ;;  %1364 = vmatpush.bf16.msrb.mxu3 %v2006_v17  ;;  %v1012_v17 = vperm.slane %v1000_v7, 1 }
 0x394   :  { %v1019_v21 = vsel %vm77_vm0, %v1002_v8, %v1011_v12 }
 0x396   :  { %1326 = vmatpush.bf16.msrb.mxu0 %v2012_v28  ;;  %1339 = vmatpush.bf16.msrb.mxu1 %v2016_v32  ;;  %v1020_v28 = vsel %vm77_vm0, %v1003_v16, %v1012_v17 }
 0x397   :  { %1352 = vmatpush.bf16.msrb.mxu2 %v2026_v42  ;;  %1365 = vmatpush.bf16.msrb.mxu3 %v2018_v33  ;;  %v1005_v42 = vperm.slane %v996_v3, 3 }
 0x39a   :  { %1327 = vmatpush.bf16.msrb.mxu0 %v2024_v41  ;;  %1340 = vmatpush.bf16.msrb.mxu1 %v2030_v45  ;;  %v1014_v45 = vperm.slane %v1000_v7, 3 }
 0x39b   :  { %1353 = vmatpush.bf16.msrb.mxu2 %v2038_v54  ;;  %1366 = vmatpush.bf16.msrb.mxu3 %v2032_v46 }
 0x39c   :  { %v1022_v54 = vsel %vm77_vm0, %v1005_v42, %v1014_v45 }
 0x39e   :  { %1328 = vmatpush.bf16.msrb.mxu0 %v2036_v53  ;;  %1341 = vmatpush.bf16.msrb.mxu1 %v2042_v57 }
 0x39f   :  { %1354 = vmatpush.bf16.msrb.mxu2 %v2050_v2  ;;  %1367 = vmatpush.bf16.msrb.mxu3 %v2044_v58 }
 0x3a2   :  { %1329 = vmatpush.bf16.msrb.mxu0 %v2048_v1  ;;  %1342 = vmatpush.bf16.msrb.mxu1 %v2054_v6 }
 0x3a3   :  { %1355 = vmatpush.bf16.msrb.mxu2 %v2062_v20  ;;  %1368 = vmatpush.bf16.msrb.mxu3 %v2056_v9 }
 0x3a6   :  { %1330 = vmatpush.bf16.msrb.mxu0 %v2060_v19  ;;  %1343 = vmatpush.bf16.msrb.mxu1 %v2066_v24 }
 0x3a7   :  { %1356 = vmatpush.bf16.msrb.mxu2 %v2074_v37  ;;  %1369 = vmatpush.bf16.msrb.mxu3 %v2068_v25  ;;  %v1013_v37 = vperm.slane %v1000_v7, 2 }
 0x3aa   :  { %1331 = vmatpush.bf16.msrb.mxu0 %v2072_v36  ;;  %1344 = vmatpush.bf16.msrb.mxu1 %v2078_v38  ;;  %v1004_v36 = vperm.slane %v996_v3, 2 }
 0x3ab   :  { %1357 = vmatpush.bf16.msrb.mxu2 %v2086_v44  ;;  %1370 = vmatpush.bf16.msrb.mxu3 %v2080_v39 }
 0x3ac   :  { %v1021_v44 = vsel %vm77_vm0, %v1004_v36, %v1013_v37 }
 0x409   :  { %v1033_v32 = vpop.f32.mrf.mxu0  ;;  %v1046_v33 = vpop.f32.mrf.mxu1 }
 0x40a   :  { %v1076_v34 = vadd.f32 %v1033_v32, %v1019_v21  ;;  %v1077_v41 = vadd.f32 %v1046_v33, %v1020_v28  ;;  %v1150_v33 = vld [vmem:[%s1149_s17] sm:$0xf] }
 0x40b   :  { %v1162_v45 = vperm.slane %v1150_v33, 1 }
 0x40c   :  { %v1701_v46 = vmul.f32 -1.442695, %v1076_v34  ;;  %v1702_v53 = vmul.f32 -1.442695, %v1077_v41  ;;  %v1161_v41 = vperm.slane %v1150_v33, 0 }
 0x40e   :  { %1837 = vpow2.f32 %v1701_v46 }
 0x40f   :  { %1839 = vpow2.f32 %v1702_v53 }
 0x410   :  { %v1059_v57 = vpop.f32.mrf.mxu2  ;;  %v1072_v58 = vpop.f32.mrf.mxu3 }
 0x411   :  { %v1079_v1 = vadd.f32 %v1072_v58, %v1022_v54  ;;  %v1035_v2 = vpop.f32.mrf.mxu0  ;;  %v1048_v6 = vpop.f32.mrf.mxu1  ;;  %v1078_v31 = vadd.f32 %v1059_v57, %v1021_v44 }
 0x412   :  { %v1164_v6 = vperm.slane %v1150_v33, 3 }
 0x413   :  { %v1703_v9 = vmul.f32 -1.442695, %v1079_v1 }
 0x414   :  { %v1838_v19 = vpop.eup %1837 }
 0x415   :  { %v1840_v20 = vpop.eup %1839  ;;  %v1083_v24 = vadd.f32 1.0, %v1838_v19  ;;  %1841 = vpow2.f32 %v1703_v9 }
 0x416   :  { %v1102_v25 = vadd.f32 1.0, %v1840_v20 }
 0x417   :  { %1843 = vrcp.f32 %v1083_v24  ;;  %v1095_v40 = vand.u32 2147483648, %v1083_v24  ;;  %v1093_v0 = vand.u32 2147483647, %v1083_v24  ;;  %vm1089_vm3 = vweird.f32 %v1083_v24 }
 0x418   :  { %1845 = vrcp.f32 %v1102_v25  ;;  %v1061_v38 = vpop.f32.mrf.mxu2  ;;  %v1074_v39 = vpop.f32.mrf.mxu3  ;;  %v1114_v47 = vand.u32 2147483648, %v1102_v25  ;;  %v1112_v52 = vand.u32 2147483647, %v1102_v25  ;;  %vm1108_vm4 = vweird.f32 %v1102_v25 }
 0x419   :  { %v1096_v60 = vor.u32 1.1754944e-38, %v1095_v40  ;;  %vm1094_vm7 = vcmp.eq.f32.partialorder %v1093_v0, 8.507059e+37 }
 0x41a   :  { %v1115_v55 = vor.u32 1.1754944e-38, %v1114_v47  ;;  %vm1113_vm8 = vcmp.eq.f32.partialorder %v1112_v52, 8.507059e+37 }
 0x41b   :  { %v1842_v30 = vpop.eup %1841 }
 0x41c   :  { %v1122_v59 = vadd.f32 1.0, %v1842_v30 }
 0x41d   :  { %v1844_v11 = vpop.eup %1843 }
 0x41e   :  { %v1846_v13 = vpop.eup %1845  ;;  %v1085_v26 = vmul.f32 %v1844_v11, %v1083_v24  ;;  %1847 = vrcp.f32 %v1122_v59  ;;  %vm1090_vm1 = vweird.f32 %v1844_v11  ;;  %v1134_v7 = vand.u32 2147483648, %v1122_v59 }
 0x41f   :  { %v1104_v23 = vmul.f32 %v1846_v13, %v1102_v25  ;;  %1849 = vtanh.f32 %v1078_v31  ;;  %vm1109_vm2 = vweird.f32 %v1846_v13  ;;  %vm1091_vm5 = vmor %vm1089_vm3, %vm1090_vm1  ;;  %vm1128_vm10 = vweird.f32 %v1122_v59 }
 0x420   :  { %v1086_v27 = vsub.f32 1.0, %v1085_v26  ;;  %vm1110_vm6 = vmor %vm1108_vm4, %vm1109_vm2  ;;  %v1132_v8 = vand.u32 2147483647, %v1122_v59  ;;  %v1135_v16 = vor.u32 1.1754944e-38, %v1134_v7 }
 0x421   :  { %v1105_v43 = vsub.f32 1.0, %v1104_v23 }
 0x422   :  { %v1087_v50 = vmul.f32 %v1844_v11, %v1086_v27  ;;  %vm1133_vm12 = vcmp.eq.f32.partialorder %v1132_v8, 8.507059e+37 }
 0x423   :  { %v1106_v29 = vmul.f32 %v1846_v13, %v1105_v43 }
 0x424   :  { %v1848_v35 = vpop.eup %1847  ;;  %v1088_v48 = vadd.f32 %v1844_v11, %v1087_v50 }
 0x425   :  { %v1107_v62 = vadd.f32 %v1846_v13, %v1106_v29  ;;  %v1124_v63 = vmul.f32 %v1848_v35, %v1122_v59  ;;  %v1850_v56 = vpop.eup %1849  ;;  %vm1129_vm9 = vweird.f32 %v1848_v35 }
 0x426   :  { %v1092_v22 = vsel %vm1091_vm5, %v1844_v11, %v1088_v48  ;;  %vm1130_vm11 = vmor %vm1128_vm10, %vm1129_vm9 }
 0x427   :  { %v1097_v4 = vsel %vm1094_vm7, %v1096_v60, %v1092_v22  ;;  %v1111_v5 = vsel %vm1110_vm6, %v1846_v13, %v1107_v62  ;;  %v1125_v15 = vsub.f32 1.0, %v1124_v63  ;;  %v1163_v13 = vperm.slane %v1150_v33, 2 }
 0x428   :  { %v1116_v14 = vsel %vm1113_vm8, %v1115_v55, %v1111_v5  ;;  %v1139_v10 = vmul.f32 %v1850_v56, %v1097_v4 }
 0x429   :  { %v1138_v18 = vmul.f32 %v1116_v14, %v2347_v49  ;;  %v1126_v51 = vmul.f32 %v1848_v35, %v1125_v15  ;;  %v1146_v49 = vld [vmem:[%s1145_s14] sm:$0xf] }
 0x42a   :  { %v1152_v34 = vperm.slane %v1146_v49, 0  ;;  %v1153_v42 = vperm.slane %v1146_v49, 1  ;;  %v1155_v2 = vperm.slane %v1146_v49, 3  ;;  %v1154_v31 = vperm.slane %v1146_v49, 2 }
 0x42b   :  { %v2393_v61 = vadd.f32 %v1139_v10, %v1138_v18  ;;  %v1127_v3 = vadd.f32 %v1848_v35, %v1126_v51 }
 0x42c   :  { %v1169_v46 = vsel %vm77_vm0, %v1152_v34, %v1161_v41  ;;  %v1170_v53 = vsel %vm77_vm0, %v1153_v42, %v1162_v45  ;;  %v1172_v20 = vsel %vm77_vm0, %v1155_v2, %v1164_v6  ;;  %v1171_v27 = vsel %vm77_vm0, %v1154_v31, %v1163_v13  ;;  %v1454_v2 = vld [vmem:[%s2478_s3 + $0x58] sm:$0xff]  ;;  %v1296_v6 = vld [vmem:[%s1295_s30] sm:$0xf] }
 0x42d   :  { %1851 = vtanh.f32 %v2393_v61  ;;  %v1131_v12 = vsel %vm1130_vm11, %v1848_v35, %v1127_v3 }
 0x42e   :  { %v1136_v21 = vsel %vm1133_vm12, %v1135_v16, %v1131_v12 }
 0x433   :  { %v1852_v17 = vpop.eup %1851 }
 0x434   :  { %v1142_v28 = vmul.f32 %v1852_v17, %v1136_v21 }
 0x436   :  { %v1173_v32 = vpack.c.bf16 %v1142_v28, %v1142_v28 }
 0x438   :  { %1182 = vmatmul.bf16.vlgmr.msra.gmra.mxu0 %v1173_v32  ;;  %1195 = vmatmul.bf16.vlgmr.msra.gmra.mxu1 %v1173_v32 }
 0x439   :  { %1208 = vmatmul.bf16.vlgmr.msra.gmra.mxu2 %v1173_v32  ;;  %1221 = vmatmul.bf16.vlgmr.msra.gmra.mxu3 %v1173_v32 }
 0x4b5   :  { %v1183_v54 = vpop.f32.mrf.mxu0  ;;  %v1196_v57 = vpop.f32.mrf.mxu1 }
 0x4b6   :  { %v1226_v58 = vadd.f32 %v1183_v54, %v1169_v46  ;;  %v1227_v1 = vadd.f32 %v1196_v57, %v1170_v53  ;;  %v1457_v57 = vld [vmem:[%s2478_s3 + $0x70] sm:$0xff] }
 0x4b8   :  { %v1708_v9 = vmul.f32 -1.442695, %v1226_v58  ;;  %v1709_v19 = vmul.f32 -1.442695, %v1227_v1  ;;  %v1456_v58 = vld [vmem:[%s2478_s3 + $0x68] sm:$0xff]  ;;  %v1455_v1 = vld [vmem:[%s2478_s3 + $0x60] sm:$0xff] }
 0x4ba   :  { %1853 = vpow2.f32 %v1708_v9  ;;  %v1300_v9 = vld [vmem:[%s1299_s8] sm:$0xf] }
 0x4bb   :  { %1855 = vpow2.f32 %v1709_v19  ;;  %v1453_v19 = vld [vmem:[%s2478_s3 + $0x50] sm:$0xff] }
 0x4bc   :  { %v1209_v24 = vpop.f32.mrf.mxu2  ;;  %v1222_v25 = vpop.f32.mrf.mxu3 }
 0x4bd   :  { %v1229_v36 = vadd.f32 %v1222_v25, %v1172_v20  ;;  %v1185_v37 = vpop.f32.mrf.mxu0  ;;  %v1198_v38 = vpop.f32.mrf.mxu1  ;;  %v1228_v50 = vadd.f32 %v1209_v24, %v1171_v27  ;;  %v1452_v20 = vld [vmem:[%s2478_s3 + $0x48] sm:$0xff]  ;;  %v1302_v24 = vperm.slane %v1296_v6, 0  ;;  %v1311_v25 = vperm.slane %v1300_v9, 0 }
 0x4be   :  { %v1312_v37 = vperm.slane %v1300_v9, 1  ;;  %v1451_v38 = vld [vmem:[%s2478_s3 + $0x40] sm:$0xff]  ;;  %v1314_v27 = vperm.slane %v1300_v9, 3 }
 0x4bf   :  { %v1710_v39 = vmul.f32 -1.442695, %v1229_v36  ;;  %v1303_v36 = vperm.slane %v1296_v6, 1 }
 0x4c0   :  { %v1854_v44 = vpop.eup %1853 }
 0x4c1   :  { %v1856_v30 = vpop.eup %1855  ;;  %v1233_v59 = vadd.f32 1.0, %v1854_v44  ;;  %1857 = vpow2.f32 %v1710_v39  ;;  %v1450_v39 = vld [vmem:[%s2478_s3 + $0x38] sm:$0xff]  ;;  %v1319_v44 = vsel %vm77_vm0, %v1302_v24, %v1311_v25 }
 0x4c2   :  { %v1252_v11 = vadd.f32 1.0, %v1856_v30  ;;  %v1320_v30 = vsel %vm77_vm0, %v1303_v36, %v1312_v37 }
 0x4c3   :  { %1859 = vrcp.f32 %v1233_v59  ;;  %v1245_v60 = vand.u32 2147483648, %v1233_v59  ;;  %v1243_v55 = vand.u32 2147483647, %v1233_v59  ;;  %vm1239_vm15 = vweird.f32 %v1233_v59 }
 0x4c4   :  { %1861 = vrcp.f32 %v1252_v11  ;;  %v1211_v26 = vpop.f32.mrf.mxu2  ;;  %v1224_v23 = vpop.f32.mrf.mxu3  ;;  %v1264_v62 = vand.u32 2147483648, %v1252_v11  ;;  %v1262_v56 = vand.u32 2147483647, %v1252_v11  ;;  %vm1258_vm1 = vweird.f32 %v1252_v11 }
 0x4c5   :  { %v1246_v15 = vor.u32 1.1754944e-38, %v1245_v60  ;;  %vm1244_vm4 = vcmp.eq.f32.partialorder %v1243_v55, 8.507059e+37  ;;  %v1305_v23 = vperm.slane %v1296_v6, 3  ;;  %v1444_v60 = vld [vmem:[%s2478_s3 + $0x8] sm:$0xff] }
 0x4c6   :  { %v1265_v18 = vor.u32 1.1754944e-38, %v1264_v62  ;;  %vm1263_vm5 = vcmp.eq.f32.partialorder %v1262_v56, 8.507059e+37 }
 0x4c7   :  { %v1858_v43 = vpop.eup %1857 }
 0x4c8   :  { %v1272_v40 = vadd.f32 1.0, %v1858_v43  ;;  %v1448_v43 = vld [vmem:[%s2478_s3 + $0x28] sm:$0xff] }
 0x4c9   :  { %v1860_v47 = vpop.eup %1859 }
 0x4ca   :  { %v1862_v0 = vpop.eup %1861  ;;  %v1235_v29 = vmul.f32 %v1860_v47, %v1233_v59  ;;  %1863 = vrcp.f32 %v1272_v40  ;;  %vm1240_vm13 = vweird.f32 %v1860_v47  ;;  %v1284_v33 = vand.u32 2147483648, %v1272_v40  ;;  %v1449_v59 = vld [vmem:[%s2478_s3 + $0x30] sm:$0xff] }
 0x4cb   :  { %v1254_v52 = vmul.f32 %v1862_v0, %v1252_v11  ;;  %1865 = vtanh.f32 %v1228_v50  ;;  %vm1259_vm14 = vweird.f32 %v1862_v0  ;;  %vm1241_vm2 = vmor %vm1239_vm15, %vm1240_vm13  ;;  %vm1278_vm7 = vweird.f32 %v1272_v40  ;;  %v1447_v50 = vld [vmem:[%s2478_s3 + $0x20] sm:$0xff] }
 0x4cc   :  { %v1236_v35 = vsub.f32 1.0, %v1235_v29  ;;  %vm1260_vm3 = vmor %vm1258_vm1, %vm1259_vm14  ;;  %v1282_v34 = vand.u32 2147483647, %v1272_v40  ;;  %v1285_v42 = vor.u32 1.1754944e-38, %v1284_v33  ;;  %v1322_v29 = vsel %vm77_vm0, %v1305_v23, %v1314_v27 }
 0x4cd   :  { %v1255_v48 = vsub.f32 1.0, %v1254_v52  ;;  %v1445_v52 = vld [vmem:[%s2478_s3 + $0x10] sm:$0xff] }
 0x4ce   :  { %v1237_v63 = vmul.f32 %v1860_v47, %v1236_v35  ;;  %vm1283_vm9 = vcmp.eq.f32.partialorder %v1282_v34, 8.507059e+37 }
 0x4cf   :  { %v1256_v22 = vmul.f32 %v1862_v0, %v1255_v48 }
 0x4d0   :  { %v1864_v4 = vpop.eup %1863  ;;  %v1238_v5 = vadd.f32 %v1860_v47, %v1237_v63 }
 0x4d1   :  { %v1257_v14 = vadd.f32 %v1862_v0, %v1256_v22  ;;  %v1274_v10 = vmul.f32 %v1864_v4, %v1272_v40  ;;  %v1866_v3 = vpop.eup %1865  ;;  %vm1279_vm6 = vweird.f32 %v1864_v4  ;;  %v1443_v22 = vld [vmem:[%s2478_s3] sm:$0xff] }
 0x4d2   :  { %v1242_v51 = vsel %vm1241_vm2, %v1860_v47, %v1238_v5  ;;  %vm1280_vm8 = vmor %vm1278_vm7, %vm1279_vm6  ;;  %vm1483_vm6 = vcmask 25600  }
 0x4d3   :  { %v1247_v7 = vsel %vm1244_vm4, %v1246_v15, %v1242_v51  ;;  %v1261_v8 = vsel %vm1260_vm3, %v1862_v0, %v1257_v14  ;;  %v1275_v12 = vsub.f32 1.0, %v1274_v10  ;;  %v1446_v0 = vld [vmem:[%s2478_s3 + $0x18] sm:$0xff]  ;;  %v1304_v10 = vperm.slane %v1296_v6, 2 }
 0x4d4   :  { %v1266_v16 = vsel %vm1263_vm5, %v1265_v18, %v1261_v8  ;;  %v1289_v17 = vmul.f32 %v1866_v3, %v1247_v7  ;;  %v1313_v18 = vperm.slane %v1300_v9, 2 }
 0x4d5   :  { %v1288_v21 = vmul.f32 %v1266_v16, %v2393_v61  ;;  %v1276_v28 = vmul.f32 %v1864_v4, %v1275_v12  ;;  %v1458_v61 = vld [vmem:[%s2478_s3 + $0x78] sm:$0xff] }
 0x4d6   :  { %1463 = vmatpush.msra.mxu0 %v1458_v61  ;;  %v1321_v7 = vsel %vm77_vm0, %v1304_v10, %v1313_v18 }
 0x4d7   :  { %v2407_v32 = vadd.f32 %v1289_v17, %v1288_v21  ;;  %v1277_v49 = vadd.f32 %v1864_v4, %v1276_v28 }
 0x4d8   :  { %1464 = vmatpush.msra.mxu0 %v1457_v57 }
 0x4d9   :  { %1867 = vtanh.f32 %v2407_v32  ;;  %v1281_v41 = vsel %vm1280_vm8, %v1864_v4, %v1277_v49 }
 0x4da   :  { %v1286_v46 = vsel %vm1283_vm9, %v1285_v42, %v1281_v41  ;;  %1465 = vmatpush.msra.mxu0 %v1456_v58 }
 0x4dc   :  { %1466 = vmatpush.msra.mxu0 %v1455_v1 }
 0x4de   :  { %1467 = vmatpush.msra.mxu0 %v1454_v2 }
 0x4df   :  { %v1868_v45 = vpop.eup %1867 }
 0x4e0   :  { %v1292_v53 = vmul.f32 %v1868_v45, %v1286_v46  ;;  %1468 = vmatpush.msra.mxu0 %v1453_v19 }
 0x4e2   :  { %v1323_v54 = vpack.c.bf16 %v1292_v53, %v1292_v53  ;;  %1469 = vmatpush.msra.mxu0 %v1452_v20 }
 0x4e4   :  { %1332 = vmatmul.bf16.vlgmr.msrb.gmra.mxu0 %v1323_v54  ;;  %1345 = vmatmul.bf16.vlgmr.msrb.gmra.mxu1 %v1323_v54 }
 0x4e5   :  { %1358 = vmatmul.bf16.vlgmr.msrb.gmra.mxu2 %v1323_v54  ;;  %1371 = vmatmul.bf16.vlgmr.msrb.gmra.mxu3 %v1323_v54 }
 0x4e6   :  { %1470 = vmatpush.msra.mxu0 %v1451_v38 }
 0x4e8   :  { %1471 = vmatpush.msra.mxu0 %v1450_v39 }
 0x4ea   :  { %1472 = vmatpush.msra.mxu0 %v1449_v59 }
 0x4ec   :  { %1473 = vmatpush.msra.mxu0 %v1448_v43 }
 0x4ee   :  { %1474 = vmatpush.msra.mxu0 %v1447_v50 }
 0x4f0   :  { %1475 = vmatpush.msra.mxu0 %v1446_v0 }
 0x4f2   :  { %1476 = vmatpush.msra.mxu0 %v1445_v52 }
 0x4f4   :  { %1477 = vmatpush.msra.mxu0 %v1444_v60 }
 0x4f6   :  { %1478 = vmatpush.msra.mxu0 %v1443_v22 }
 0x561   :  { %v1333_v11 = vpop.f32.mrf.mxu0  ;;  %v1346_v31 = vpop.f32.mrf.mxu1 }
 0x562   :  { %v1376_v13 = vadd.f32 %v1333_v11, %v1319_v44  ;;  %v1377_v26 = vadd.f32 %v1346_v31, %v1320_v30 }
 0x564   :  { %v1715_v40 = vmul.f32 -1.442695, %v1376_v13  ;;  %v1716_v47 = vmul.f32 -1.442695, %v1377_v26 }
 0x566   :  { %1869 = vpow2.f32 %v1715_v40 }
 0x567   :  { %1871 = vpow2.f32 %v1716_v47 }
 0x568   :  { %v1359_v35 = vpop.f32.mrf.mxu2  ;;  %v1372_v48 = vpop.f32.mrf.mxu3 }
 0x569   :  { %v1379_v62 = vadd.f32 %v1372_v48, %v1322_v29  ;;  %v1335_v63 = vpop.f32.mrf.mxu0  ;;  %v1348_v55 = vpop.f32.mrf.mxu1  ;;  %v1378_v17 = vadd.f32 %v1359_v35, %v1321_v7 }
 0x56b   :  { %v1717_v56 = vmul.f32 -1.442695, %v1379_v62 }
 0x56c   :  { %v1870_v4 = vpop.eup %1869 }
 0x56d   :  { %v1872_v5 = vpop.eup %1871  ;;  %v1383_v15 = vadd.f32 1.0, %v1870_v4  ;;  %1873 = vpow2.f32 %v1717_v56 }
 0x56e   :  { %v1402_v14 = vadd.f32 1.0, %v1872_v5 }
 0x56f   :  { %1875 = vrcp.f32 %v1383_v15  ;;  %v1395_v41 = vand.u32 2147483648, %v1383_v15  ;;  %v1393_v46 = vand.u32 2147483647, %v1383_v15  ;;  %vm1389_vm0 = vweird.f32 %v1383_v15 }
 0x570   :  { %1877 = vrcp.f32 %v1402_v14  ;;  %v1361_v51 = vpop.f32.mrf.mxu2  ;;  %v1374_v3 = vpop.f32.mrf.mxu3  ;;  %v1414_v42 = vand.u32 2147483648, %v1402_v14  ;;  %v1412_v54 = vand.u32 2147483647, %v1402_v14  ;;  %vm1408_vm12 = vweird.f32 %v1402_v14 }
 0x571   :  { %v1396_v58 = vor.u32 1.1754944e-38, %v1395_v41  ;;  %vm1394_vm15 = vcmp.eq.f32.partialorder %v1393_v46, 8.507059e+37 }
 0x572   :  { %v1415_v6 = vor.u32 1.1754944e-38, %v1414_v42  ;;  %vm1413_vm1 = vcmp.eq.f32.partialorder %v1412_v54, 8.507059e+37 }
 0x573   :  { %v1874_v8 = vpop.eup %1873 }
 0x574   :  { %v1422_v12 = vadd.f32 1.0, %v1874_v8 }
 0x575   :  { %v1876_v16 = vpop.eup %1875 }
 0x576   :  { %v1878_v21 = vpop.eup %1877  ;;  %v1385_v28 = vmul.f32 %v1876_v16, %v1383_v15  ;;  %1879 = vrcp.f32 %v1422_v12  ;;  %vm1390_vm10 = vweird.f32 %v1876_v16  ;;  %v1434_v59 = vand.u32 2147483648, %v1422_v12 }
 0x577   :  { %v1404_v49 = vmul.f32 %v1878_v21, %v1402_v14  ;;  %1881 = vtanh.f32 %v1378_v17  ;;  %vm1409_vm11 = vweird.f32 %v1878_v21  ;;  %vm1391_vm13 = vmor %vm1389_vm0, %vm1390_vm10  ;;  %vm1428_vm3 = vweird.f32 %v1422_v12 }
 0x578   :  { %v1386_v33 = vsub.f32 1.0, %v1385_v28  ;;  %vm1410_vm14 = vmor %vm1408_vm12, %vm1409_vm11  ;;  %v1432_v11 = vand.u32 2147483647, %v1422_v12  ;;  %v1435_v13 = vor.u32 1.1754944e-38, %v1434_v59 }
 0x579   :  { %v1405_v34 = vsub.f32 1.0, %v1404_v49 }
 0x57a   :  { %v1387_v45 = vmul.f32 %v1876_v16, %v1386_v33  ;;  %vm1433_vm5 = vcmp.eq.f32.partialorder %v1432_v11, 8.507059e+37 }
 0x57b   :  { %v1406_v53 = vmul.f32 %v1878_v21, %v1405_v34 }
 0x57c   :  { %v1880_v61 = vpop.eup %1879  ;;  %v1388_v57 = vadd.f32 %v1876_v16, %v1387_v45 }
 0x57d   :  { %v1407_v1 = vadd.f32 %v1878_v21, %v1406_v53  ;;  %v1424_v2 = vmul.f32 %v1880_v61, %v1422_v12  ;;  %v1882_v19 = vpop.eup %1881  ;;  %vm1429_vm2 = vweird.f32 %v1880_v61 }
 0x57e   :  { %v1392_v9 = vsel %vm1391_vm13, %v1876_v16, %v1388_v57  ;;  %vm1430_vm4 = vmor %vm1428_vm3, %vm1429_vm2 }
 0x57f   :  { %v1397_v20 = vsel %vm1394_vm15, %v1396_v58, %v1392_v9  ;;  %v1411_v24 = vsel %vm1410_vm14, %v1878_v21, %v1407_v1  ;;  %v1425_v25 = vsub.f32 1.0, %v1424_v2 }
 0x580   :  { %v1416_v36 = vsel %vm1413_vm1, %v1415_v6, %v1411_v24  ;;  %v1439_v37 = vmul.f32 %v1882_v19, %v1397_v20 }
 0x581   :  { %v1438_v38 = vmul.f32 %v1416_v36, %v2407_v32  ;;  %v1426_v39 = vmul.f32 %v1880_v61, %v1425_v25  ;;  %v1756_v32 = vld [vmem:[%s2479_s4] ss:$0 sm:$0xff] }
 0x583   :  { %v1440_v44 = vadd.f32 %v1439_v37, %v1438_v38  ;;  %v1427_v30 = vadd.f32 %v1880_v61, %v1426_v39 }
 0x585   :  { %1883 = vtanh.f32 %v1440_v44  ;;  %v1431_v31 = vsel %vm1430_vm4, %v1880_v61, %v1427_v30 }
 0x586   :  { %v1436_v23 = vsel %vm1433_vm5, %v1435_v13, %v1431_v31 }
 0x58b   :  { %v1884_v26 = vpop.eup %1883 }
 0x58c   :  { %v1442_v27 = vmul.f32 %v1884_v26, %v1436_v23 }
 0x58e   :  { %1479 = vmatmul.f32.vlgmr.msra.gmra.mxu0 %v1442_v27 }
 0x60b   :  { %v1480_v43 = vpop.f32.mrf.mxu0 }
 0x60c   :  { %v1481_v40 = vadd.f32 %v1756_v32, %v1480_v43 }
 0x60e   :  { %1484 = vst.msk [vmem:[#allocation7] sm:$0x3] %vm1483_vm6, %v1481_v40 }
 0x60f   :  { %1495 = dma.vmem_to_hbm [thread:$0]  %s1491_s7, 32, %s1493_s10, [#allocation4]  }
 0x610   :  { %1949 = dma.done.wait [#allocation4], 32  }
 0x611   :  { %1950 = vsyncadd [#allocation4], 4294967264 }
 0x612   :  { %1500 = vsyncpa [#allocation3], 1 }
 0x613   :  { %1501 = vsyncpa [#allocation4], 1 }
 0x614   :  { %1502 = vsyncpa [#allocation5], 1 }

</bundles_post_ra>
